<compile_context>
chip_gen: v7x
topology: tpu7x:2x2x1
jax: 0.10.0
libtpu: 0.0.40
codegen_flags: <defaults>
</compile_context>

<pallas_src>
import functools

import jax
import jax.numpy as jnp
from jax.experimental import pallas as pl
from jax.experimental.pallas import tpu as pltpu

INPUT_SIZE = 28
HIDDEN = 64
NUM_CLASSES = 10
LANE = 128        # TPU lane width; head output zero-padded to this
HIDDEN_PAD = 128  # hidden dim zero-padded to a full lane tile
SUBLANE = 8       # f32 sublane tile


def _round_up(x, m):
    return (x + m - 1) // m * m


def lstm_head_kernel(x_ref, wih_ref, whh_ref, b_ref, wout_ref, bout_ref,
                     o_ref, xw_ref, *, seq_len):
    """LSTM recurrence over T steps + padded Linear head for one batch tile.

    x_ref    : (T*TB, I)      bf16  time-major rows (row = t*TB + b)
    wih_ref  : (I, 4*HP)      bf16  input->gates weight, gates (i,f,o,g), each
                                    gate block lane-padded H -> HP
    whh_ref  : (HP, 4*HP)     bf16  hidden->gates weight, padded rows & blocks
    b_ref    : (1, 4*HP)      f32   bias_ih + bias_hh, padded per gate block
    wout_ref : (HP, 128)      bf16  head weight, zero-padded rows/cols
    bout_ref : (1, 128)       f32   head bias, zero-padded
    o_ref    : (TB, 128)      f32   output tile (only [:, :10] is meaningful)
    xw_ref   : (T*TB, 4*HP)   f32   VMEM scratch: hoisted input projection
    """
    rows = x_ref.shape[0]
    TB = rows // seq_len
    HP = whh_ref.shape[0]  # lane-padded hidden (128)

    # ---- Hoisted input projection: ONE bf16 matmul (f32 acc), bias folded in.
    xw_ref[...] = (
        jnp.dot(x_ref[...], wih_ref[...], preferred_element_type=jnp.float32)
        + b_ref[...]
    )

    def step(t, carry):
        h, c = carry                                  # (TB, HP) f32 each
        row0 = pl.multiple_of(t * TB, TB)             # sublane-aligned start
        # Recurrent matmul in bf16 (native MXU input type), f32 accumulation.
        # whh_ref is read inside the step so the unrolled loop does not pin
        # ~32 vregs of weights and risk spills on the serial chain.
        gates = xw_ref[pl.ds(row0, TB), :] + jnp.dot(
            h.astype(jnp.bfloat16), whh_ref[...],
            preferred_element_type=jnp.float32)       # (TB, 4*HP) f32
        # Gate order (i, f, o, g); every block is a full 128-lane tile so all
        # slices / combines are whole-vreg aligned (no 64-lane relayout).
        # sigmoid(x) = 0.5*tanh(0.5*x) + 0.5 -> one EUP tanh over i|f|o.
        sig = 0.5 * jnp.tanh(0.5 * gates[:, : 3 * HP]) + 0.5
        i_g = sig[:, 0:HP]
        f_g = sig[:, HP:2 * HP]
        o_g = sig[:, 2 * HP:3 * HP]
        g_g = jnp.tanh(gates[:, 3 * HP:])
        c_new = f_g * c + i_g * g_g
        h_new = o_g * jnp.tanh(c_new)
        return (h_new, c_new)

    h0 = jnp.zeros((TB, HP), jnp.float32)
    c0 = jnp.zeros((TB, HP), jnp.float32)
    # Short static trip count: full unroll for scheduler visibility; partial
    # unroll for longer sequences to bound live ranges (spill risk at TB=256).
    unroll = True if seq_len <= 8 else 4
    h_T, _ = jax.lax.fori_loop(0, seq_len, step, (h0, c0), unroll=unroll)
    # TODO(synk): hold w_hh in the MXU across steps (matmul_push_rhs /
    # matmul_acc_lhs / matmul_pop) if bundle dumps show per-step RHS reloads.

    # ---- Linear head, lane-dense (128-wide) so the store is unmasked.
    o_ref[...] = (
        jnp.dot(h_T.astype(jnp.bfloat16), wout_ref[...],
                preferred_element_type=jnp.float32)
        + bout_ref[...]
    ).astype(o_ref.dtype)


def permute_gate_columns(w):
    """Reorder last-dim gate blocks from PyTorch (i, f, g, o) to (i, f, o, g)."""
    i, f, g, o = jnp.split(w, 4, axis=-1)
    return jnp.concatenate([i, f, o, g], axis=-1)


def pad_gate_columns(w, h, hp):
    """Zero-pad each of the 4 gate blocks along the last dim from h to hp."""
    blocks = jnp.split(w, 4, axis=-1)
    pad = [(0, 0)] * (w.ndim - 1) + [(0, hp - h)]
    return jnp.concatenate([jnp.pad(b, pad) for b in blocks], axis=-1)


def init_params(key, input_size=INPUT_SIZE, hidden=HIDDEN, n_out=NUM_CLASSES):
    """Deterministic init mimicking PyTorch default U(-1/sqrt(H), 1/sqrt(H))."""
    ks = jax.random.split(key, 6)
    stdv = 1.0 / jnp.sqrt(jnp.float32(hidden))
    u = lambda k, shape: jax.random.uniform(k, shape, jnp.float32, -stdv, stdv)
    w_ih = u(ks[0], (4 * hidden, input_size))   # LSTM weight_ih_l0
    w_hh = u(ks[1], (4 * hidden, hidden))       # LSTM weight_hh_l0
    b_ih = u(ks[2], (4 * hidden,))
    b_hh = u(ks[3], (4 * hidden,))
    w_out = u(ks[4], (n_out, hidden))           # Linear weight
    b_out = u(ks[5], (n_out,))                  # Linear bias
    return (w_ih, w_hh, b_ih, b_hh, w_out, b_out)


def _tile_plan(B):
    """Chip-aware batch tiling: (TB, B_pad, num_tiles)."""
    kind = ""
    try:
        kind = jax.devices()[0].device_kind.lower()
    except Exception:
        pass
    is_v7 = ("v7" in kind) or ("7x" in kind)
    # v6e/v7x: 2x256 MXU -> TB up to 256 (fits VMEM: ~19 MB < 32 MiB default).
    # v5e/other: 128x128 MXU M dim + 16 MiB scoped-VMEM default -> cap 128.
    cap = 256 if (("v6" in kind) or is_v7) else 128
    TB = min(_round_up(B, SUBLANE), cap)
    if is_v7:
        # Ensure >= 2 tiles (even count) so both TensorCores get work.
        TB = min(TB, max(SUBLANE, _round_up((B + 1) // 2, SUBLANE)))
    B_pad = _round_up(B, TB)
    num_tiles = B_pad // TB
    if is_v7 and (num_tiles % 2):
        num_tiles += 1
        B_pad = num_tiles * TB
    return TB, B_pad, num_tiles


@jax.jit
def rnn_forward(x, params):
    """x: (B, T, I) float32 -> (B, 10) float32, matching the PyTorch module."""
    w_ih, w_hh, b_ih, b_hh, w_out, b_out = params
    B, T, I = x.shape
    H = w_hh.shape[1]
    HP = HIDDEN_PAD
    n_out = w_out.shape[0]

    TB, B_pad, num_tiles = _tile_plan(B)

    # Weight prep: transpose, permute gates to (i,f,o,g), lane-pad each gate
    # block H -> HP, fold biases, cast matmul operands to bf16 once.
    wih_t = pad_gate_columns(
        permute_gate_columns(w_ih.T.astype(jnp.float32)), H, HP
    ).astype(jnp.bfloat16)                                               # (I, 4*HP)
    whh_cols = pad_gate_columns(
        permute_gate_columns(w_hh.T.astype(jnp.float32)), H, HP)         # (H, 4*HP)
    whh_t = jnp.pad(whh_cols, ((0, HP - H), (0, 0))).astype(jnp.bfloat16)  # (HP, 4*HP)
    bias = pad_gate_columns(
        permute_gate_columns((b_ih + b_hh).reshape(1, 4 * H).astype(jnp.float32)),
        H, HP)                                                           # (1, 4*HP)
    wout_p = jnp.zeros((HP, LANE), jnp.bfloat16).at[:H, :n_out].set(
        w_out.T.astype(jnp.bfloat16))                                    # (HP, 128)
    bout_p = jnp.zeros((1, LANE), jnp.float32).at[:, :n_out].set(
        b_out.astype(jnp.float32))                                       # (1, 128)

    # Lay x out as (num_tiles, T*TB, I) bf16: batch-padded, time-major within a
    # tile, so each kernel instance gets a 2-D DMA-contiguous slab (no in-kernel
    # reshape) and x HBM bytes are halved.
    # TODO(synk): this repack is one extra HBM pass over x in the wrapper; fold
    # away with allow_input_fusion / upstream layout if it shows up in traces.
    x_p = jnp.pad(x.astype(jnp.float32), ((0, B_pad - B), (0, 0), (0, 0)))
    x_tiles = jnp.transpose(
        x_p.reshape(num_tiles, TB, T, I), (0, 2, 1, 3)
    ).reshape(num_tiles, T * TB, I).astype(jnp.bfloat16)

    out_pad = pl.pallas_call(
        functools.partial(lstm_head_kernel, seq_len=T),
        out_shape=jax.ShapeDtypeStruct((B_pad, LANE), jnp.float32),
        grid=(num_tiles,),
        in_specs=[
            pl.BlockSpec((None, T * TB, I), lambda i: (i, 0, 0)),   # x tile (bf16)
            pl.BlockSpec((I, 4 * HP), lambda i: (0, 0)),            # w_ih^T (bf16)
            pl.BlockSpec((HP, 4 * HP), lambda i: (0, 0)),           # w_hh^T (bf16)
            pl.BlockSpec((1, 4 * HP), lambda i: (0, 0)),            # bias (f32)
            pl.BlockSpec((HP, LANE), lambda i: (0, 0)),             # w_out^T (bf16)
            pl.BlockSpec((1, LANE), lambda i: (0, 0)),              # b_out (f32)
        ],
        out_specs=pl.BlockSpec((TB, LANE), lambda i: (i, 0)),
        scratch_shapes=[pltpu.VMEM((T * TB, 4 * HP), jnp.float32)],
        compiler_params=pltpu.CompilerParams(
            # Batch tiles are independent -> shard across v7x's 2 TensorCores.
            dimension_semantics=("parallel",),
        ),
    )(x_tiles, wih_t, whh_t, bias, wout_p, bout_p)

    return out_pad[:B, :n_out]


def rnn_forward_ref(x, params):
    """Pure-JAX f32 reference (PyTorch gate order i, f, g, o) for validation."""
    w_ih, w_hh, b_ih, b_hh, w_out, b_out = params
    B, T, I = x.shape
    H = w_hh.shape[1]

    def cell(carry, x_t):
        h, c = carry
        gates = x_t @ w_ih.T + h @ w_hh.T + b_ih + b_hh
        i = jax.nn.sigmoid(gates[:, 0:H])
        f = jax.nn.sigmoid(gates[:, H:2 * H])
        g = jnp.tanh(gates[:, 2 * H:3 * H])
        o = jax.nn.sigmoid(gates[:, 3 * H:4 * H])
        c = f * c + i * g
        h = o * jnp.tanh(c)
        return (h, c), None

    h0 = jnp.zeros((B, H), jnp.float32)
    c0 = jnp.zeros((B, H), jnp.float32)
    (h_T, _), _ = jax.lax.scan(cell, (h0, c0), jnp.transpose(x, (1, 0, 2)))
    return h_T @ w_out.T + b_out


if __name__ == "__main__":
    key = jax.random.PRNGKey(0)
    k_param, k_x = jax.random.split(key)

    B, T = 2, 8  # small batch, short sequence; each step is a 28-dim row
    params = init_params(k_param)
    x = jax.random.normal(k_x, (B, T, INPUT_SIZE), jnp.float32)

    out = rnn_forward(x, params)
    jax.block_until_ready(out)
    assert out.shape == (B, NUM_CLASSES) and out.dtype == jnp.float32

    ref = rnn_forward_ref(x, params)
    max_err = float(jnp.max(jnp.abs(out - ref)))
    # bf16 matmul operands (f32 accumulation) -> small drift vs f32 reference.
    assert jnp.allclose(out, ref, atol=2e-2, rtol=2e-2), max_err

    print("KERNEL_OK")
</pallas_src>

<mosaic_0001>
module attributes {stable_mosaic.version = 11 : i64} {
  func.func @lstm_head_kernel(%arg0: i32, %arg1: memref<1x64x28xbf16, #tpu.memory_space<vmem>>, %arg2: memref<28x512xbf16, #tpu.memory_space<vmem>>, %arg3: memref<128x512xbf16, #tpu.memory_space<vmem>>, %arg4: memref<1x512xf32, #tpu.memory_space<vmem>>, %arg5: memref<128x128xbf16, #tpu.memory_space<vmem>>, %arg6: memref<1x128xf32, #tpu.memory_space<vmem>>, %arg7: memref<8x128xf32, #tpu.memory_space<vmem>>, %arg8: memref<64x512xf32, #tpu.memory_space<vmem>>) attributes {dimension_semantics = [#tpu.dimension_semantics<parallel>], iteration_bounds = array<i64: 1>, scalar_prefetch = 0 : i64, scratch_operands = 1 : i64, tpu.core_type = #tpu.core_type<tc>, window_params = [{transform_indices = @transform_0, window_bounds = array<i64: 1, 64, 28>}, {pipeline_mode = #tpu.pipeline_mode<synchronous>, transform_indices = @transform_1, window_bounds = array<i64: 28, 512>}, {pipeline_mode = #tpu.pipeline_mode<synchronous>, transform_indices = @transform_2, window_bounds = array<i64: 128, 512>}, {pipeline_mode = #tpu.pipeline_mode<synchronous>, transform_indices = @transform_3, window_bounds = array<i64: 1, 512>}, {pipeline_mode = #tpu.pipeline_mode<synchronous>, transform_indices = @transform_4, window_bounds = array<i64: 128, 128>}, {pipeline_mode = #tpu.pipeline_mode<synchronous>, transform_indices = @transform_5, window_bounds = array<i64: 1, 128>}, {transform_indices = @transform_6, window_bounds = array<i64: 8, 128>}]} {
    %c0 = arith.constant 0 : index
    %c0_0 = arith.constant 0 : index
    %c0_1 = arith.constant 0 : index
    %0 = vector.load %arg1[%c0, %c0_0, %c0_1] : memref<1x64x28xbf16, #tpu.memory_space<vmem>>, vector<1x64x28xbf16>
    %1 = vector.shape_cast %0 : vector<1x64x28xbf16> to vector<64x28xbf16>
    %c0_2 = arith.constant 0 : index
    %c0_3 = arith.constant 0 : index
    %2 = vector.load %arg2[%c0_2, %c0_3] : memref<28x512xbf16, #tpu.memory_space<vmem>>, vector<28x512xbf16>
    %cst = arith.constant dense<0.000000e+00> : vector<64x512xf32>
    %3 = tpu.matmul %1, %2, %cst {dimension_numbers = #tpu.dot_dimension_numbers<[1], [0], [0], [1], [0, 0, 1, 1], [], []>} : vector<64x28xbf16>, vector<28x512xbf16>, vector<64x512xf32> -> vector<64x512xf32>
    %c0_4 = arith.constant 0 : index
    %c0_5 = arith.constant 0 : index
    %4 = vector.load %arg4[%c0_4, %c0_5] : memref<1x512xf32, #tpu.memory_space<vmem>>, vector<1x512xf32>
    %5 = vector.broadcast %4 : vector<1x512xf32> to vector<64x512xf32>
    %6 = arith.addf %3, %5 : vector<64x512xf32>
    %c0_6 = arith.constant 0 : index
    %c0_7 = arith.constant 0 : index
    %7 = vector.load %arg8[%c0_6, %c0_7] : memref<64x512xf32, #tpu.memory_space<vmem>>, vector<64x512xf32>
    tpu.vector_store %arg8[%c0_6, %c0_7], %6 {strides = array<i32>} : memref<64x512xf32, #tpu.memory_space<vmem>>, vector<64x512xf32>,
    %cst_8 = arith.constant 0.000000e+00 : f32
    %8 = vector.broadcast %cst_8 : f32 to vector<8x128xf32>
    %cst_9 = arith.constant 0.000000e+00 : f32
    %9 = vector.broadcast %cst_9 : f32 to vector<8x128xf32>
    %c0_i32 = arith.constant 0 : i32
    %c8_i32 = arith.constant 8 : i32
    %10 = arith.muli %c0_i32, %c8_i32 : i32
    %11 = tpu.assume_multiple %10, 8 : i32
    %12 = arith.index_cast %11 : i32 to index
    %c0_10 = arith.constant 0 : index
    %13 = vector.load %arg8[%12, %c0_10] : memref<64x512xf32, #tpu.memory_space<vmem>>, vector<8x512xf32>
    %14 = arith.truncf %8 : vector<8x128xf32> to vector<8x128xbf16>
    %c0_11 = arith.constant 0 : index
    %c0_12 = arith.constant 0 : index
    %15 = vector.load %arg3[%c0_11, %c0_12] : memref<128x512xbf16, #tpu.memory_space<vmem>>, vector<128x512xbf16>
    %cst_13 = arith.constant dense<0.000000e+00> : vector<8x512xf32>
    %16 = tpu.matmul %14, %15, %cst_13 {dimension_numbers = #tpu.dot_dimension_numbers<[1], [0], [0], [1], [0, 0, 1, 1], [], []>} : vector<8x128xbf16>, vector<128x512xbf16>, vector<8x512xf32> -> vector<8x512xf32>
    %17 = arith.addf %13, %16 : vector<8x512xf32>
    %18 = vector.extract_strided_slice %17 {offsets = [0, 0], sizes = [8, 384], strides = [1, 1]} : vector<8x512xf32> to vector<8x384xf32>
    %cst_14 = arith.constant 5.000000e-01 : f32
    %19 = vector.broadcast %cst_14 : f32 to vector<8x384xf32>
    %20 = arith.mulf %19, %18 : vector<8x384xf32>
    %21 = math.tanh %20 : vector<8x384xf32>
    %cst_15 = arith.constant 5.000000e-01 : f32
    %22 = vector.broadcast %cst_15 : f32 to vector<8x384xf32>
    %23 = arith.mulf %22, %21 : vector<8x384xf32>
    %cst_16 = arith.constant 5.000000e-01 : f32
    %24 = vector.broadcast %cst_16 : f32 to vector<8x384xf32>
    %25 = arith.addf %23, %24 : vector<8x384xf32>
    %26 = vector.extract_strided_slice %25 {offsets = [0, 0], sizes = [8, 128], strides = [1, 1]} : vector<8x384xf32> to vector<8x128xf32>
    %27 = vector.extract_strided_slice %25 {offsets = [0, 128], sizes = [8, 128], strides = [1, 1]} : vector<8x384xf32> to vector<8x128xf32>
    %28 = vector.extract_strided_slice %25 {offsets = [0, 256], sizes = [8, 128], strides = [1, 1]} : vector<8x384xf32> to vector<8x128xf32>
    %29 = vector.extract_strided_slice %17 {offsets = [0, 384], sizes = [8, 128], strides = [1, 1]} : vector<8x512xf32> to vector<8x128xf32>
    %30 = math.tanh %29 : vector<8x128xf32>
    %31 = arith.mulf %27, %9 : vector<8x128xf32>
    %32 = arith.mulf %26, %30 : vector<8x128xf32>
    %33 = arith.addf %31, %32 : vector<8x128xf32>
    %34 = math.tanh %33 : vector<8x128xf32>
    %35 = arith.mulf %28, %34 : vector<8x128xf32>
    %c1_i32 = arith.constant 1 : i32
    %c8_i32_17 = arith.constant 8 : i32
    %36 = arith.muli %c1_i32, %c8_i32_17 : i32
    %37 = tpu.assume_multiple %36, 8 : i32
    %38 = arith.index_cast %37 : i32 to index
    %c0_18 = arith.constant 0 : index
    %39 = vector.load %arg8[%38, %c0_18] : memref<64x512xf32, #tpu.memory_space<vmem>>, vector<8x512xf32>
    %40 = arith.truncf %35 : vector<8x128xf32> to vector<8x128xbf16>
    %c0_19 = arith.constant 0 : index
    %c0_20 = arith.constant 0 : index
    %41 = vector.load %arg3[%c0_19, %c0_20] : memref<128x512xbf16, #tpu.memory_space<vmem>>, vector<128x512xbf16>
    %cst_21 = arith.constant dense<0.000000e+00> : vector<8x512xf32>
    %42 = tpu.matmul %40, %41, %cst_21 {dimension_numbers = #tpu.dot_dimension_numbers<[1], [0], [0], [1], [0, 0, 1, 1], [], []>} : vector<8x128xbf16>, vector<128x512xbf16>, vector<8x512xf32> -> vector<8x512xf32>
    %43 = arith.addf %39, %42 : vector<8x512xf32>
    %44 = vector.extract_strided_slice %43 {offsets = [0, 0], sizes = [8, 384], strides = [1, 1]} : vector<8x512xf32> to vector<8x384xf32>
    %cst_22 = arith.constant 5.000000e-01 : f32
    %45 = vector.broadcast %cst_22 : f32 to vector<8x384xf32>
    %46 = arith.mulf %45, %44 : vector<8x384xf32>
    %47 = math.tanh %46 : vector<8x384xf32>
    %cst_23 = arith.constant 5.000000e-01 : f32
    %48 = vector.broadcast %cst_23 : f32 to vector<8x384xf32>
    %49 = arith.mulf %48, %47 : vector<8x384xf32>
    %cst_24 = arith.constant 5.000000e-01 : f32
    %50 = vector.broadcast %cst_24 : f32 to vector<8x384xf32>
    %51 = arith.addf %49, %50 : vector<8x384xf32>
    %52 = vector.extract_strided_slice %51 {offsets = [0, 0], sizes = [8, 128], strides = [1, 1]} : vector<8x384xf32> to vector<8x128xf32>
    %53 = vector.extract_strided_slice %51 {offsets = [0, 128], sizes = [8, 128], strides = [1, 1]} : vector<8x384xf32> to vector<8x128xf32>
    %54 = vector.extract_strided_slice %51 {offsets = [0, 256], sizes = [8, 128], strides = [1, 1]} : vector<8x384xf32> to vector<8x128xf32>
    %55 = vector.extract_strided_slice %43 {offsets = [0, 384], sizes = [8, 128], strides = [1, 1]} : vector<8x512xf32> to vector<8x128xf32>
    %56 = math.tanh %55 : vector<8x128xf32>
    %57 = arith.mulf %53, %33 : vector<8x128xf32>
    %58 = arith.mulf %52, %56 : vector<8x128xf32>
    %59 = arith.addf %57, %58 : vector<8x128xf32>
    %60 = math.tanh %59 : vector<8x128xf32>
    %61 = arith.mulf %54, %60 : vector<8x128xf32>
    %c2_i32 = arith.constant 2 : i32
    %c8_i32_25 = arith.constant 8 : i32
    %62 = arith.muli %c2_i32, %c8_i32_25 : i32
    %63 = tpu.assume_multiple %62, 8 : i32
    %64 = arith.index_cast %63 : i32 to index
    %c0_26 = arith.constant 0 : index
    %65 = vector.load %arg8[%64, %c0_26] : memref<64x512xf32, #tpu.memory_space<vmem>>, vector<8x512xf32>
    %66 = arith.truncf %61 : vector<8x128xf32> to vector<8x128xbf16>
    %c0_27 = arith.constant 0 : index
    %c0_28 = arith.constant 0 : index
    %67 = vector.load %arg3[%c0_27, %c0_28] : memref<128x512xbf16, #tpu.memory_space<vmem>>, vector<128x512xbf16>
    %cst_29 = arith.constant dense<0.000000e+00> : vector<8x512xf32>
    %68 = tpu.matmul %66, %67, %cst_29 {dimension_numbers = #tpu.dot_dimension_numbers<[1], [0], [0], [1], [0, 0, 1, 1], [], []>} : vector<8x128xbf16>, vector<128x512xbf16>, vector<8x512xf32> -> vector<8x512xf32>
    %69 = arith.addf %65, %68 : vector<8x512xf32>
    %70 = vector.extract_strided_slice %69 {offsets = [0, 0], sizes = [8, 384], strides = [1, 1]} : vector<8x512xf32> to vector<8x384xf32>
    %cst_30 = arith.constant 5.000000e-01 : f32
    %71 = vector.broadcast %cst_30 : f32 to vector<8x384xf32>
    %72 = arith.mulf %71, %70 : vector<8x384xf32>
    %73 = math.tanh %72 : vector<8x384xf32>
    %cst_31 = arith.constant 5.000000e-01 : f32
    %74 = vector.broadcast %cst_31 : f32 to vector<8x384xf32>
    %75 = arith.mulf %74, %73 : vector<8x384xf32>
    %cst_32 = arith.constant 5.000000e-01 : f32
    %76 = vector.broadcast %cst_32 : f32 to vector<8x384xf32>
    %77 = arith.addf %75, %76 : vector<8x384xf32>
    %78 = vector.extract_strided_slice %77 {offsets = [0, 0], sizes = [8, 128], strides = [1, 1]} : vector<8x384xf32> to vector<8x128xf32>
    %79 = vector.extract_strided_slice %77 {offsets = [0, 128], sizes = [8, 128], strides = [1, 1]} : vector<8x384xf32> to vector<8x128xf32>
    %80 = vector.extract_strided_slice %77 {offsets = [0, 256], sizes = [8, 128], strides = [1, 1]} : vector<8x384xf32> to vector<8x128xf32>
    %81 = vector.extract_strided_slice %69 {offsets = [0, 384], sizes = [8, 128], strides = [1, 1]} : vector<8x512xf32> to vector<8x128xf32>
    %82 = math.tanh %81 : vector<8x128xf32>
    %83 = arith.mulf %79, %59 : vector<8x128xf32>
    %84 = arith.mulf %78, %82 : vector<8x128xf32>
    %85 = arith.addf %83, %84 : vector<8x128xf32>
    %86 = math.tanh %85 : vector<8x128xf32>
    %87 = arith.mulf %80, %86 : vector<8x128xf32>
    %c3_i32 = arith.constant 3 : i32
    %c8_i32_33 = arith.constant 8 : i32
    %88 = arith.muli %c3_i32, %c8_i32_33 : i32
    %89 = tpu.assume_multiple %88, 8 : i32
    %90 = arith.index_cast %89 : i32 to index
    %c0_34 = arith.constant 0 : index
    %91 = vector.load %arg8[%90, %c0_34] : memref<64x512xf32, #tpu.memory_space<vmem>>, vector<8x512xf32>
    %92 = arith.truncf %87 : vector<8x128xf32> to vector<8x128xbf16>
    %c0_35 = arith.constant 0 : index
    %c0_36 = arith.constant 0 : index
    %93 = vector.load %arg3[%c0_35, %c0_36] : memref<128x512xbf16, #tpu.memory_space<vmem>>, vector<128x512xbf16>
    %cst_37 = arith.constant dense<0.000000e+00> : vector<8x512xf32>
    %94 = tpu.matmul %92, %93, %cst_37 {dimension_numbers = #tpu.dot_dimension_numbers<[1], [0], [0], [1], [0, 0, 1, 1], [], []>} : vector<8x128xbf16>, vector<128x512xbf16>, vector<8x512xf32> -> vector<8x512xf32>
    %95 = arith.addf %91, %94 : vector<8x512xf32>
    %96 = vector.extract_strided_slice %95 {offsets = [0, 0], sizes = [8, 384], strides = [1, 1]} : vector<8x512xf32> to vector<8x384xf32>
    %cst_38 = arith.constant 5.000000e-01 : f32
    %97 = vector.broadcast %cst_38 : f32 to vector<8x384xf32>
    %98 = arith.mulf %97, %96 : vector<8x384xf32>
    %99 = math.tanh %98 : vector<8x384xf32>
    %cst_39 = arith.constant 5.000000e-01 : f32
    %100 = vector.broadcast %cst_39 : f32 to vector<8x384xf32>
    %101 = arith.mulf %100, %99 : vector<8x384xf32>
    %cst_40 = arith.constant 5.000000e-01 : f32
    %102 = vector.broadcast %cst_40 : f32 to vector<8x384xf32>
    %103 = arith.addf %101, %102 : vector<8x384xf32>
    %104 = vector.extract_strided_slice %103 {offsets = [0, 0], sizes = [8, 128], strides = [1, 1]} : vector<8x384xf32> to vector<8x128xf32>
    %105 = vector.extract_strided_slice %103 {offsets = [0, 128], sizes = [8, 128], strides = [1, 1]} : vector<8x384xf32> to vector<8x128xf32>
    %106 = vector.extract_strided_slice %103 {offsets = [0, 256], sizes = [8, 128], strides = [1, 1]} : vector<8x384xf32> to vector<8x128xf32>
    %107 = vector.extract_strided_slice %95 {offsets = [0, 384], sizes = [8, 128], strides = [1, 1]} : vector<8x512xf32> to vector<8x128xf32>
    %108 = math.tanh %107 : vector<8x128xf32>
    %109 = arith.mulf %105, %85 : vector<8x128xf32>
    %110 = arith.mulf %104, %108 : vector<8x128xf32>
    %111 = arith.addf %109, %110 : vector<8x128xf32>
    %112 = math.tanh %111 : vector<8x128xf32>
    %113 = arith.mulf %106, %112 : vector<8x128xf32>
    %c4_i32 = arith.constant 4 : i32
    %c8_i32_41 = arith.constant 8 : i32
    %114 = arith.muli %c4_i32, %c8_i32_41 : i32
    %115 = tpu.assume_multiple %114, 8 : i32
    %116 = arith.index_cast %115 : i32 to index
    %c0_42 = arith.constant 0 : index
    %117 = vector.load %arg8[%116, %c0_42] : memref<64x512xf32, #tpu.memory_space<vmem>>, vector<8x512xf32>
    %118 = arith.truncf %113 : vector<8x128xf32> to vector<8x128xbf16>
    %c0_43 = arith.constant 0 : index
    %c0_44 = arith.constant 0 : index
    %119 = vector.load %arg3[%c0_43, %c0_44] : memref<128x512xbf16, #tpu.memory_space<vmem>>, vector<128x512xbf16>
    %cst_45 = arith.constant dense<0.000000e+00> : vector<8x512xf32>
    %120 = tpu.matmul %118, %119, %cst_45 {dimension_numbers = #tpu.dot_dimension_numbers<[1], [0], [0], [1], [0, 0, 1, 1], [], []>} : vector<8x128xbf16>, vector<128x512xbf16>, vector<8x512xf32> -> vector<8x512xf32>
    %121 = arith.addf %117, %120 : vector<8x512xf32>
    %122 = vector.extract_strided_slice %121 {offsets = [0, 0], sizes = [8, 384], strides = [1, 1]} : vector<8x512xf32> to vector<8x384xf32>
    %cst_46 = arith.constant 5.000000e-01 : f32
    %123 = vector.broadcast %cst_46 : f32 to vector<8x384xf32>
    %124 = arith.mulf %123, %122 : vector<8x384xf32>
    %125 = math.tanh %124 : vector<8x384xf32>
    %cst_47 = arith.constant 5.000000e-01 : f32
    %126 = vector.broadcast %cst_47 : f32 to vector<8x384xf32>
    %127 = arith.mulf %126, %125 : vector<8x384xf32>
    %cst_48 = arith.constant 5.000000e-01 : f32
    %128 = vector.broadcast %cst_48 : f32 to vector<8x384xf32>
    %129 = arith.addf %127, %128 : vector<8x384xf32>
    %130 = vector.extract_strided_slice %129 {offsets = [0, 0], sizes = [8, 128], strides = [1, 1]} : vector<8x384xf32> to vector<8x128xf32>
    %131 = vector.extract_strided_slice %129 {offsets = [0, 128], sizes = [8, 128], strides = [1, 1]} : vector<8x384xf32> to vector<8x128xf32>
    %132 = vector.extract_strided_slice %129 {offsets = [0, 256], sizes = [8, 128], strides = [1, 1]} : vector<8x384xf32> to vector<8x128xf32>
    %133 = vector.extract_strided_slice %121 {offsets = [0, 384], sizes = [8, 128], strides = [1, 1]} : vector<8x512xf32> to vector<8x128xf32>
    %134 = math.tanh %133 : vector<8x128xf32>
    %135 = arith.mulf %131, %111 : vector<8x128xf32>
    %136 = arith.mulf %130, %134 : vector<8x128xf32>
    %137 = arith.addf %135, %136 : vector<8x128xf32>
    %138 = math.tanh %137 : vector<8x128xf32>
    %139 = arith.mulf %132, %138 : vector<8x128xf32>
    %c5_i32 = arith.constant 5 : i32
    %c8_i32_49 = arith.constant 8 : i32
    %140 = arith.muli %c5_i32, %c8_i32_49 : i32
    %141 = tpu.assume_multiple %140, 8 : i32
    %142 = arith.index_cast %141 : i32 to index
    %c0_50 = arith.constant 0 : index
    %143 = vector.load %arg8[%142, %c0_50] : memref<64x512xf32, #tpu.memory_space<vmem>>, vector<8x512xf32>
    %144 = arith.truncf %139 : vector<8x128xf32> to vector<8x128xbf16>
    %c0_51 = arith.constant 0 : index
    %c0_52 = arith.constant 0 : index
    %145 = vector.load %arg3[%c0_51, %c0_52] : memref<128x512xbf16, #tpu.memory_space<vmem>>, vector<128x512xbf16>
    %cst_53 = arith.constant dense<0.000000e+00> : vector<8x512xf32>
    %146 = tpu.matmul %144, %145, %cst_53 {dimension_numbers = #tpu.dot_dimension_numbers<[1], [0], [0], [1], [0, 0, 1, 1], [], []>} : vector<8x128xbf16>, vector<128x512xbf16>, vector<8x512xf32> -> vector<8x512xf32>
    %147 = arith.addf %143, %146 : vector<8x512xf32>
    %148 = vector.extract_strided_slice %147 {offsets = [0, 0], sizes = [8, 384], strides = [1, 1]} : vector<8x512xf32> to vector<8x384xf32>
    %cst_54 = arith.constant 5.000000e-01 : f32
    %149 = vector.broadcast %cst_54 : f32 to vector<8x384xf32>
    %150 = arith.mulf %149, %148 : vector<8x384xf32>
    %151 = math.tanh %150 : vector<8x384xf32>
    %cst_55 = arith.constant 5.000000e-01 : f32
    %152 = vector.broadcast %cst_55 : f32 to vector<8x384xf32>
    %153 = arith.mulf %152, %151 : vector<8x384xf32>
    %cst_56 = arith.constant 5.000000e-01 : f32
    %154 = vector.broadcast %cst_56 : f32 to vector<8x384xf32>
    %155 = arith.addf %153, %154 : vector<8x384xf32>
    %156 = vector.extract_strided_slice %155 {offsets = [0, 0], sizes = [8, 128], strides = [1, 1]} : vector<8x384xf32> to vector<8x128xf32>
    %157 = vector.extract_strided_slice %155 {offsets = [0, 128], sizes = [8, 128], strides = [1, 1]} : vector<8x384xf32> to vector<8x128xf32>
    %158 = vector.extract_strided_slice %155 {offsets = [0, 256], sizes = [8, 128], strides = [1, 1]} : vector<8x384xf32> to vector<8x128xf32>
    %159 = vector.extract_strided_slice %147 {offsets = [0, 384], sizes = [8, 128], strides = [1, 1]} : vector<8x512xf32> to vector<8x128xf32>
    %160 = math.tanh %159 : vector<8x128xf32>
    %161 = arith.mulf %157, %137 : vector<8x128xf32>
    %162 = arith.mulf %156, %160 : vector<8x128xf32>
    %163 = arith.addf %161, %162 : vector<8x128xf32>
    %164 = math.tanh %163 : vector<8x128xf32>
    %165 = arith.mulf %158, %164 : vector<8x128xf32>
    %c6_i32 = arith.constant 6 : i32
    %c8_i32_57 = arith.constant 8 : i32
    %166 = arith.muli %c6_i32, %c8_i32_57 : i32
    %167 = tpu.assume_multiple %166, 8 : i32
    %168 = arith.index_cast %167 : i32 to index
    %c0_58 = arith.constant 0 : index
    %169 = vector.load %arg8[%168, %c0_58] : memref<64x512xf32, #tpu.memory_space<vmem>>, vector<8x512xf32>
    %170 = arith.truncf %165 : vector<8x128xf32> to vector<8x128xbf16>
    %c0_59 = arith.constant 0 : index
    %c0_60 = arith.constant 0 : index
    %171 = vector.load %arg3[%c0_59, %c0_60] : memref<128x512xbf16, #tpu.memory_space<vmem>>, vector<128x512xbf16>
    %cst_61 = arith.constant dense<0.000000e+00> : vector<8x512xf32>
    %172 = tpu.matmul %170, %171, %cst_61 {dimension_numbers = #tpu.dot_dimension_numbers<[1], [0], [0], [1], [0, 0, 1, 1], [], []>} : vector<8x128xbf16>, vector<128x512xbf16>, vector<8x512xf32> -> vector<8x512xf32>
    %173 = arith.addf %169, %172 : vector<8x512xf32>
    %174 = vector.extract_strided_slice %173 {offsets = [0, 0], sizes = [8, 384], strides = [1, 1]} : vector<8x512xf32> to vector<8x384xf32>
    %cst_62 = arith.constant 5.000000e-01 : f32
    %175 = vector.broadcast %cst_62 : f32 to vector<8x384xf32>
    %176 = arith.mulf %175, %174 : vector<8x384xf32>
    %177 = math.tanh %176 : vector<8x384xf32>
    %cst_63 = arith.constant 5.000000e-01 : f32
    %178 = vector.broadcast %cst_63 : f32 to vector<8x384xf32>
    %179 = arith.mulf %178, %177 : vector<8x384xf32>
    %cst_64 = arith.constant 5.000000e-01 : f32
    %180 = vector.broadcast %cst_64 : f32 to vector<8x384xf32>
    %181 = arith.addf %179, %180 : vector<8x384xf32>
    %182 = vector.extract_strided_slice %181 {offsets = [0, 0], sizes = [8, 128], strides = [1, 1]} : vector<8x384xf32> to vector<8x128xf32>
    %183 = vector.extract_strided_slice %181 {offsets = [0, 128], sizes = [8, 128], strides = [1, 1]} : vector<8x384xf32> to vector<8x128xf32>
    %184 = vector.extract_strided_slice %181 {offsets = [0, 256], sizes = [8, 128], strides = [1, 1]} : vector<8x384xf32> to vector<8x128xf32>
    %185 = vector.extract_strided_slice %173 {offsets = [0, 384], sizes = [8, 128], strides = [1, 1]} : vector<8x512xf32> to vector<8x128xf32>
    %186 = math.tanh %185 : vector<8x128xf32>
    %187 = arith.mulf %183, %163 : vector<8x128xf32>
    %188 = arith.mulf %182, %186 : vector<8x128xf32>
    %189 = arith.addf %187, %188 : vector<8x128xf32>
    %190 = math.tanh %189 : vector<8x128xf32>
    %191 = arith.mulf %184, %190 : vector<8x128xf32>
    %c7_i32 = arith.constant 7 : i32
    %c8_i32_65 = arith.constant 8 : i32
    %192 = arith.muli %c7_i32, %c8_i32_65 : i32
    %193 = tpu.assume_multiple %192, 8 : i32
    %194 = arith.index_cast %193 : i32 to index
    %c0_66 = arith.constant 0 : index
    %195 = vector.load %arg8[%194, %c0_66] : memref<64x512xf32, #tpu.memory_space<vmem>>, vector<8x512xf32>
    %196 = arith.truncf %191 : vector<8x128xf32> to vector<8x128xbf16>
    %c0_67 = arith.constant 0 : index
    %c0_68 = arith.constant 0 : index
    %197 = vector.load %arg3[%c0_67, %c0_68] : memref<128x512xbf16, #tpu.memory_space<vmem>>, vector<128x512xbf16>
    %cst_69 = arith.constant dense<0.000000e+00> : vector<8x512xf32>
    %198 = tpu.matmul %196, %197, %cst_69 {dimension_numbers = #tpu.dot_dimension_numbers<[1], [0], [0], [1], [0, 0, 1, 1], [], []>} : vector<8x128xbf16>, vector<128x512xbf16>, vector<8x512xf32> -> vector<8x512xf32>
    %199 = arith.addf %195, %198 : vector<8x512xf32>
    %200 = vector.extract_strided_slice %199 {offsets = [0, 0], sizes = [8, 384], strides = [1, 1]} : vector<8x512xf32> to vector<8x384xf32>
    %cst_70 = arith.constant 5.000000e-01 : f32
    %201 = vector.broadcast %cst_70 : f32 to vector<8x384xf32>
    %202 = arith.mulf %201, %200 : vector<8x384xf32>
    %203 = math.tanh %202 : vector<8x384xf32>
    %cst_71 = arith.constant 5.000000e-01 : f32
    %204 = vector.broadcast %cst_71 : f32 to vector<8x384xf32>
    %205 = arith.mulf %204, %203 : vector<8x384xf32>
    %cst_72 = arith.constant 5.000000e-01 : f32
    %206 = vector.broadcast %cst_72 : f32 to vector<8x384xf32>
    %207 = arith.addf %205, %206 : vector<8x384xf32>
    %208 = vector.extract_strided_slice %207 {offsets = [0, 0], sizes = [8, 128], strides = [1, 1]} : vector<8x384xf32> to vector<8x128xf32>
    %209 = vector.extract_strided_slice %207 {offsets = [0, 128], sizes = [8, 128], strides = [1, 1]} : vector<8x384xf32> to vector<8x128xf32>
    %210 = vector.extract_strided_slice %207 {offsets = [0, 256], sizes = [8, 128], strides = [1, 1]} : vector<8x384xf32> to vector<8x128xf32>
    %211 = vector.extract_strided_slice %199 {offsets = [0, 384], sizes = [8, 128], strides = [1, 1]} : vector<8x512xf32> to vector<8x128xf32>
    %212 = math.tanh %211 : vector<8x128xf32>
    %213 = arith.mulf %209, %189 : vector<8x128xf32>
    %214 = arith.mulf %208, %212 : vector<8x128xf32>
    %215 = arith.addf %213, %214 : vector<8x128xf32>
    %216 = math.tanh %215 : vector<8x128xf32>
    %217 = arith.mulf %210, %216 : vector<8x128xf32>
    %c8_i32_73 = arith.constant 8 : i32
    %218 = arith.truncf %217 : vector<8x128xf32> to vector<8x128xbf16>
    %c0_74 = arith.constant 0 : index
    %c0_75 = arith.constant 0 : index
    %219 = vector.load %arg5[%c0_74, %c0_75] : memref<128x128xbf16, #tpu.memory_space<vmem>>, vector<128x128xbf16>
    %cst_76 = arith.constant dense<0.000000e+00> : vector<8x128xf32>
    %220 = tpu.matmul %218, %219, %cst_76 {dimension_numbers = #tpu.dot_dimension_numbers<[1], [0], [0], [1], [0, 0, 1, 1], [], []>} : vector<8x128xbf16>, vector<128x128xbf16>, vector<8x128xf32> -> vector<8x128xf32>
    %c0_77 = arith.constant 0 : index
    %c0_78 = arith.constant 0 : index
    %221 = vector.load %arg6[%c0_77, %c0_78] : memref<1x128xf32, #tpu.memory_space<vmem>>, vector<1x128xf32>
    %222 = vector.broadcast %221 : vector<1x128xf32> to vector<8x128xf32>
    %223 = arith.addf %220, %222 : vector<8x128xf32>
    %c0_79 = arith.constant 0 : index
    %c0_80 = arith.constant 0 : index
    %224 = vector.load %arg7[%c0_79, %c0_80] : memref<8x128xf32, #tpu.memory_space<vmem>>, vector<8x128xf32>
    tpu.vector_store %arg7[%c0_79, %c0_80], %223 {strides = array<i32>} : memref<8x128xf32, #tpu.memory_space<vmem>>, vector<8x128xf32>,
    return
  }
  func.func @transform_0(%arg0: i32) -> (i32, i32, i32) {
    %c0_i32 = arith.constant 0 : i32
    %c0_i32_0 = arith.constant 0 : i32
    %c0_i32_1 = arith.constant 0 : i32
    return %arg0, %c0_i32, %c0_i32_0 : i32, i32, i32
  }
  func.func @transform_1(%arg0: i32) -> (i32, i32) {
    %c0_i32 = arith.constant 0 : i32
    %c0_i32_0 = arith.constant 0 : i32
    %c0_i32_1 = arith.constant 0 : i32
    return %c0_i32, %c0_i32_0 : i32, i32
  }
  func.func @transform_2(%arg0: i32) -> (i32, i32) {
    %c0_i32 = arith.constant 0 : i32
    %c0_i32_0 = arith.constant 0 : i32
    %c0_i32_1 = arith.constant 0 : i32
    return %c0_i32, %c0_i32_0 : i32, i32
  }
  func.func @transform_3(%arg0: i32) -> (i32, i32) {
    %c0_i32 = arith.constant 0 : i32
    %c0_i32_0 = arith.constant 0 : i32
    %c0_i32_1 = arith.constant 0 : i32
    return %c0_i32, %c0_i32_0 : i32, i32
  }
  func.func @transform_4(%arg0: i32) -> (i32, i32) {
    %c0_i32 = arith.constant 0 : i32
    %c0_i32_0 = arith.constant 0 : i32
    %c0_i32_1 = arith.constant 0 : i32
    return %c0_i32, %c0_i32_0 : i32, i32
  }
  func.func @transform_5(%arg0: i32) -> (i32, i32) {
    %c0_i32 = arith.constant 0 : i32
    %c0_i32_0 = arith.constant 0 : i32
    %c0_i32_1 = arith.constant 0 : i32
    return %c0_i32, %c0_i32_0 : i32, i32
  }
  func.func @transform_6(%arg0: i32) -> (i32, i32) {
    %c0_i32 = arith.constant 0 : i32
    %c0_i32_0 = arith.constant 0 : i32
    return %arg0, %c0_i32 : i32, i32
  }
}

</mosaic_0001>

<bundles_post_ra>
// kernel: rnn_forward.1
= control target key start
LH: loop header
LB: loop body
LE: loop exit
PB: predicated region body
PF: predicated region fallthrough
CT: control target
= control target key end

     0   :  { %v2632_v1 = vmov 0   ;;  %vm131_vm0 = vcmask 1045504   ;;  %vm118_vm1 = vcmask 228352   ;;  %v42_v47 = vlaneseq  ;;  %s2625_s1 = inlined_call_operand.vmem [shape: bf16[28,512], index: 1, kind: input, shape index: {}]   ;;  %s2626_s0 = inlined_call_operand.vmem [shape: bf16[1,64,28], index: 0, kind: input, shape index: {}]   ;;  %s2627_s2 = inlined_call_operand.vmem [shape: bf16[128,512], index: 2, kind: input, shape index: {}]   ;;  %s2628_s3 = inlined_call_operand.vmem [shape: f32[1,512], index: 3, kind: input, shape index: {}]   ;;  %s2629_s4 = inlined_call_operand.vmem [shape: bf16[128,128], index: 4, kind: input, shape index: {}]   ;;  %s2630_s5 = inlined_call_operand.vmem [shape: f32[1,128], index: 5, kind: input, shape index: {}]   ;;  %s2631_s6 = inlined_call_operand.vmem [shape: f32[8,128], index: 6, kind: output, shape index: {}]  }
   0x1   :  { %v1628_v0 = vld [vmem:[%s2625_s1 + $0x4] ss:$16 sps:$4 sm:$0xff]   ;;  %176 = vmatprep.mubr.bf16.mxu0 %v2632_v1  ;;  %249 = vmatprep.mubr.bf16.mxu1 %v2632_v1  ;;  %v1630_v2 = vld [vmem:[%s2625_s1 + $0xc] ss:$16 sps:$4 sm:$0xff]   ;;  %v1632_v3 = vld [vmem:[%s2625_s1] ss:$16 sps:$4 sm:$0xff]  }
   0x2   :  { %144 = vmatprep.subr.bf16.mxu0 %v1628_v0  ;;  %v1633_v4 = vld [vmem:[%s2625_s1 + $0x8] ss:$16 sps:$4 sm:$0xff]   ;;  %217 = vmatprep.subr.bf16.mxu1 %v1630_v2  ;;  %v1634_v5 = vld [vmem:[%s2625_s1 + $0x24] ss:$16 sps:$4 sm:$0x3f]   ;;  %v43_v48 = vshrl.u32 %v42_v47, 7 }
   0x3   :  { %145 = vmatpush1.bf16.msra.mxu0 %v1632_v3  ;;  %218 = vmatpush1.bf16.msra.mxu1 %v1633_v4  ;;  %v1636_v6 = vld [vmem:[%s2625_s1 + $0x2c] ss:$16 sps:$4 sm:$0x3f]   ;;  %v1638_v7 = vld [vmem:[%s2625_s1 + $0x20] ss:$16 sps:$4 sm:$0x3f]  }
   0x4   :  { %1545 = vmatprep.subr.msk.bf16.mxu0 %vm131_vm0, %v1634_v5  ;;  %v1639_v8 = vld [vmem:[%s2625_s1 + $0x28] ss:$16 sps:$4 sm:$0x3f]   ;;  %v1640_v9 = vld [vmem:[%s2626_s0] sm:$0xff]   ;;  %1550 = vmatprep.subr.msk.bf16.mxu1 %vm131_vm0, %v1636_v6  ;;  %v133_v10 = vsel %vm131_vm0, %v1638_v7, 0  ;;  %v1666_v31 = vld [vmem:[%s2626_s0 + $0x10] sm:$0xff]  }
   0x5   :  { %v139_v11 = vsel %vm131_vm0, %v1639_v8, 0  ;;  %v1882_v12 = vld [vmem:[%s2627_s2 + $0x4] ss:$16 sps:$4 sm:$0xff]   ;;  %v1887_v13 = vld [vmem:[%s2627_s2 + $0xc] ss:$16 sps:$4 sm:$0xff]   ;;  %v52_v49 = vsub.s32 2, %v43_v48 }
   0x6   :  { %v1892_v14 = vld [vmem:[%s2627_s2] ss:$16 sps:$4 sm:$0xff]   ;;  %v1898_v15 = vld [vmem:[%s2627_s2 + $0x8] ss:$16 sps:$4 sm:$0xff]   ;;  %v1904_v16 = vld [vmem:[%s2627_s2 + $0x24] ss:$16 sps:$4 sm:$0xff]  }
   0x7   :  { %147 = vmatpush1.bf16.msra.mxu0 %v133_v10  ;;  %220 = vmatpush1.bf16.msra.mxu1 %v139_v11  ;;  %v1911_v17 = vld [vmem:[%s2627_s2 + $0x2c] ss:$16 sps:$4 sm:$0xff]   ;;  %v1916_v18 = vld [vmem:[%s2627_s2 + $0x20] ss:$16 sps:$4 sm:$0xff]   ;;  %v1923_v19 = vld [vmem:[%s2627_s2 + $0x28] ss:$16 sps:$4 sm:$0xff]  }
   0x8   :  { %521 = vmatprep.subr.bf16.mxu0 %v1882_v12  ;;  %562 = vmatprep.subr.bf16.mxu1 %v1887_v13  ;;  %v1930_v20 = vld [vmem:[%s2627_s2 + $0x44] ss:$16 sps:$4 sm:$0xff]   ;;  %v1937_v21 = vld [vmem:[%s2627_s2 + $0x4c] ss:$16 sps:$4 sm:$0xff]   ;;  %v1945_v23 = vld [vmem:[%s2627_s2 + $0x40] ss:$16 sps:$4 sm:$0xff]  }
   0x9   :  { %v1653_v22 = vld [vmem:[%s2626_s0 + $0x8] sm:$0xff]   ;;  %v1959_v25 = vld [vmem:[%s2627_s2 + $0x64] ss:$16 sps:$4 sm:$0xff]   ;;  %v1971_v27 = vld [vmem:[%s2627_s2 + $0x60] ss:$16 sps:$4 sm:$0xff]   ;;  %v56_v50 = vsub.s32 3, %v43_v48 }
   0xa   :  { %1546 = vmatmul.mubr.msk.bf16.vlgmr.msra.gmra.mrb[0].mxu0 %vm118_vm1, %v1640_v9  ;;  %1551 = vmatmul.mubr.msk.bf16.vlgmr.msra.gmra.mrb[0].mxu1 %vm118_vm1, %v1640_v9  ;;  %v1952_v24 = vld [vmem:[%s2627_s2 + $0x48] ss:$16 sps:$4 sm:$0xff]   ;;  %v1964_v26 = vld [vmem:[%s2627_s2 + $0x6c] ss:$16 sps:$4 sm:$0xff]   ;;  %v1985_v29 = vld [vmem:[%s2627_s2 + $0x84] ss:$16 sps:$4 sm:$0xff]  }
   0xb   :  { %522 = vmatpush1.bf16.msra.mxu0 %v1892_v14  ;;  %563 = vmatpush1.bf16.msra.mxu1 %v1898_v15  ;;  %v1978_v28 = vld [vmem:[%s2627_s2 + $0x68] ss:$16 sps:$4 sm:$0xff]   ;;  %v1990_v30 = vld [vmem:[%s2627_s2 + $0x8c] ss:$16 sps:$4 sm:$0xff]   ;;  %v2000_v32 = vld [vmem:[%s2627_s2 + $0x80] ss:$16 sps:$4 sm:$0xff]  }
   0xc   :  { %523 = vmatprep.subr.bf16.mxu0 %v1904_v16  ;;  %564 = vmatprep.subr.bf16.mxu1 %v1911_v17  ;;  %v2007_v33 = vld [vmem:[%s2627_s2 + $0x88] ss:$16 sps:$4 sm:$0xff]   ;;  %v2012_v34 = vld [vmem:[%s2627_s2 + $0xa4] ss:$16 sps:$4 sm:$0xff]   ;;  %v2019_v35 = vld [vmem:[%s2627_s2 + $0xac] ss:$16 sps:$4 sm:$0xff]  }
   0xd   :  { %186 = vmatprep.mubr.bf16.mxu0 %v2632_v1  ;;  %259 = vmatprep.mubr.bf16.mxu1 %v2632_v1  ;;  %v2026_v36 = vld [vmem:[%s2627_s2 + $0xa0] ss:$16 sps:$4 sm:$0xff]   ;;  %v2031_v37 = vld [vmem:[%s2627_s2 + $0xa8] ss:$16 sps:$4 sm:$0xff]   ;;  %v2038_v38 = vld [vmem:[%s2627_s2 + $0xc4] ss:$16 sps:$4 sm:$0xff]  }
   0xe   :  { %v2045_v39 = vld [vmem:[%s2627_s2 + $0xcc] ss:$16 sps:$4 sm:$0xff]   ;;  %v2057_v41 = vld [vmem:[%s2627_s2 + $0xc0] ss:$16 sps:$4 sm:$0xff]   ;;  %v2062_v42 = vld [vmem:[%s2627_s2 + $0xc8] ss:$16 sps:$4 sm:$0xff]  }
   0xf   :  { %524 = vmatpush1.bf16.msra.mxu0 %v1916_v18  ;;  %565 = vmatpush1.bf16.msra.mxu1 %v1923_v19  ;;  %v1679_v40 = vld [vmem:[%s2626_s0 + $0x18] sm:$0xff]   ;;  %v2069_v43 = vld [vmem:[%s2627_s2 + $0xe4] ss:$16 sps:$4 sm:$0xff]   ;;  %v2083_v45 = vld [vmem:[%s2627_s2 + $0xe0] ss:$16 sps:$4 sm:$0xff]   ;;  %v44_v51 = vsub.s32 0, %v43_v48 }
  0x10   :  { %525 = vmatprep.subr.bf16.mxu0 %v1930_v20  ;;  %566 = vmatprep.subr.bf16.mxu1 %v1937_v21  ;;  %v2074_v44 = vld [vmem:[%s2627_s2 + $0xec] ss:$16 sps:$4 sm:$0xff]   ;;  %v2088_v46 = vld [vmem:[%s2627_s2 + $0xe8] ss:$16 sps:$4 sm:$0xff]   ;;  %v40_v52 = vld [vmem:[%s2628_s3] sm:$0xf] }
  0x11   :  { %v48_v53 = vsub.s32 1, %v43_v48  ;;  %v2137_v54 = vrot.slane %v40_v52, %v52_v49  ;;  %v2143_v57 = vrot.slane %v40_v52, %v56_v50  ;;  %v45_v58 = vrot.slane %v40_v52, %v44_v51 }
  0x12   :  { %1547 = vmatmul.mubr.msk.bf16.gmra.mrb[4].mxu0 %vm118_vm1, %v1653_v22  ;;  %1552 = vmatmul.mubr.msk.bf16.gmra.mrb[4].mxu1 %vm118_vm1, %v1653_v22  ;;  %vm1814_vm2 = vmmov 0  }
  0x13   :  { %526 = vmatpush1.bf16.msra.mxu0 %v1945_v23  ;;  %567 = vmatpush1.bf16.msra.mxu1 %v1952_v24  ;;  %v49_v61 = vrot.slane %v40_v52, %v48_v53 }
  0x14   :  { %527 = vmatprep.subr.bf16.mxu0 %v1959_v25  ;;  %568 = vmatprep.subr.bf16.mxu1 %v1964_v26 }
  0x15   :  { %196 = vmatprep.mubr.bf16.mxu0 %v2632_v1  ;;  %269 = vmatprep.mubr.bf16.mxu1 %v2632_v1 }
  0x17   :  { %528 = vmatpush1.bf16.msra.mxu0 %v1971_v27  ;;  %569 = vmatpush1.bf16.msra.mxu1 %v1978_v28 }
  0x18   :  { %529 = vmatprep.subr.bf16.mxu0 %v1985_v29  ;;  %570 = vmatprep.subr.bf16.mxu1 %v1990_v30 }
  0x1a   :  { %1548 = vmatmul.mubr.msk.bf16.gmra.mrb[8].mxu0 %vm118_vm1, %v1666_v31  ;;  %1553 = vmatmul.mubr.msk.bf16.gmra.mrb[8].mxu1 %vm118_vm1, %v1666_v31 }
  0x1b   :  { %530 = vmatpush1.bf16.msra.mxu0 %v2000_v32  ;;  %571 = vmatpush1.bf16.msra.mxu1 %v2007_v33 }
  0x1c   :  { %531 = vmatprep.subr.bf16.mxu0 %v2012_v34  ;;  %572 = vmatprep.subr.bf16.mxu1 %v2019_v35 }
  0x1d   :  { %206 = vmatprep.mubr.bf16.mxu0 %v2632_v1  ;;  %279 = vmatprep.mubr.bf16.mxu1 %v2632_v1 }
  0x1f   :  { %532 = vmatpush1.bf16.msra.mxu0 %v2026_v36  ;;  %573 = vmatpush1.bf16.msra.mxu1 %v2031_v37 }
  0x20   :  { %533 = vmatprep.subr.bf16.mxu0 %v2038_v38  ;;  %574 = vmatprep.subr.bf16.mxu1 %v2045_v39 }
  0x22   :  { %1549 = vmatmul.mubr.msk.bf16.gmra.mrb[12].mxu0 %vm118_vm1, %v1679_v40  ;;  %1554 = vmatmul.mubr.msk.bf16.gmra.mrb[12].mxu1 %vm118_vm1, %v1679_v40 }
  0x23   :  { %534 = vmatpush1.bf16.msra.mxu0 %v2057_v41  ;;  %575 = vmatpush1.bf16.msra.mxu1 %v2062_v42 }
  0x24   :  { %535 = vmatprep.subr.bf16.mxu0 %v2069_v43  ;;  %576 = vmatprep.subr.bf16.mxu1 %v2074_v44 }
  0x25   :  { %553 = vmatprep.mubr.bf16.mxu0 %v2632_v1  ;;  %594 = vmatprep.mubr.bf16.mxu1 %v2632_v1 }
  0x27   :  { %536 = vmatpush1.bf16.msra.mxu0 %v2083_v45  ;;  %577 = vmatpush1.bf16.msra.mxu1 %v2088_v46 }
  0x28   :  { %633 = vmatprep.subr.bf16.mxu0 %v1882_v12  ;;  %674 = vmatprep.subr.bf16.mxu1 %v1887_v13 }
  0x2a   :  { %554 = vmatmul.mubr.bf16.vlgmr.msra.gmra.mrb[16].mxu0 %v2632_v1  ;;  %595 = vmatmul.mubr.bf16.vlgmr.msra.gmra.mrb[16].mxu1 %v2632_v1 }
  0x2b   :  { %634 = vmatpush1.bf16.msra.mxu0 %v1892_v14  ;;  %675 = vmatpush1.bf16.msra.mxu1 %v1898_v15 }
  0x2c   :  { %635 = vmatprep.subr.bf16.mxu0 %v1904_v16  ;;  %676 = vmatprep.subr.bf16.mxu1 %v1911_v17 }
  0x2d   :  { %665 = vmatprep.mubr.bf16.mxu0 %v2632_v1  ;;  %706 = vmatprep.mubr.bf16.mxu1 %v2632_v1 }
  0x2f   :  { %636 = vmatpush1.bf16.msra.mxu0 %v1916_v18  ;;  %677 = vmatpush1.bf16.msra.mxu1 %v1923_v19 }
  0x30   :  { %637 = vmatprep.subr.bf16.mxu0 %v1930_v20  ;;  %678 = vmatprep.subr.bf16.mxu1 %v1937_v21 }
  0x33   :  { %638 = vmatpush1.bf16.msra.mxu0 %v1945_v23  ;;  %679 = vmatpush1.bf16.msra.mxu1 %v1952_v24 }
  0x34   :  { %639 = vmatprep.subr.bf16.mxu0 %v1959_v25  ;;  %680 = vmatprep.subr.bf16.mxu1 %v1964_v26 }
  0x37   :  { %640 = vmatpush1.bf16.msra.mxu0 %v1971_v27  ;;  %681 = vmatpush1.bf16.msra.mxu1 %v1978_v28 }
  0x38   :  { %641 = vmatprep.subr.bf16.mxu0 %v1985_v29  ;;  %682 = vmatprep.subr.bf16.mxu1 %v1990_v30 }
  0x3b   :  { %642 = vmatpush1.bf16.msra.mxu0 %v2000_v32  ;;  %683 = vmatpush1.bf16.msra.mxu1 %v2007_v33 }
  0x3c   :  { %643 = vmatprep.subr.bf16.mxu0 %v2012_v34  ;;  %684 = vmatprep.subr.bf16.mxu1 %v2019_v35 }
  0x3f   :  { %644 = vmatpush1.bf16.msra.mxu0 %v2026_v36  ;;  %685 = vmatpush1.bf16.msra.mxu1 %v2031_v37 }
  0x40   :  { %645 = vmatprep.subr.bf16.mxu0 %v2038_v38  ;;  %686 = vmatprep.subr.bf16.mxu1 %v2045_v39 }
  0x43   :  { %646 = vmatpush1.bf16.msra.mxu0 %v2057_v41  ;;  %687 = vmatpush1.bf16.msra.mxu1 %v2062_v42 }
  0x44   :  { %647 = vmatprep.subr.bf16.mxu0 %v2069_v43  ;;  %688 = vmatprep.subr.bf16.mxu1 %v2074_v44 }
  0x47   :  { %648 = vmatpush1.bf16.msra.mxu0 %v2083_v45  ;;  %689 = vmatpush1.bf16.msra.mxu1 %v2088_v46 }
  0x48   :  { %745 = vmatprep.subr.bf16.mxu0 %v1882_v12  ;;  %786 = vmatprep.subr.bf16.mxu1 %v1887_v13 }
  0xdd   :  { %v2139_v55 = vpop.f32.mrb[0].mxu0  ;;  %v2141_v56 = vpop.f32.mrb[0].mxu1 }
  0xde   :  { %v180_v59 = vpop.f32.mrb[1].mxu0  ;;  %v253_v60 = vpop.f32.mrb[1].mxu1 }
  0xdf   :  { %v182_v62 = vpop.f32.mrb[2].mxu0  ;;  %v255_v63 = vpop.f32.mrb[2].mxu1 }
  0xe0   :  { %v2145_v0 = vadd.f32 %v182_v62, %v45_v58  ;;  %v184_v2 = vpop.f32.mrb[3].mxu0  ;;  %v2148_v3 = vadd.f32 %v255_v63, %v2137_v54  ;;  %v257_v4 = vpop.f32.mrb[3].mxu1 }
  0xe1   :  { %v2150_v5 = vadd.f32 %v184_v2, %v49_v61  ;;  %v2153_v6 = vadd.f32 %v257_v4, %v2143_v57 }
  0xe5   :  { %v188_v7 = vpop.f32.mrb[4].mxu0  ;;  %v261_v8 = vpop.f32.mrb[4].mxu1 }
  0xe6   :  { %v2155_v9 = vadd.f32 %v188_v7, %v45_v58  ;;  %v190_v10 = vpop.f32.mrb[5].mxu0  ;;  %v2158_v11 = vadd.f32 %v261_v8, %v2137_v54  ;;  %v263_v22 = vpop.f32.mrb[5].mxu1 }
  0xe7   :  { %v2160_v31 = vadd.f32 %v190_v10, %v49_v61  ;;  %v192_v40 = vpop.f32.mrb[6].mxu0  ;;  %v2163_v47 = vadd.f32 %v263_v22, %v2143_v57  ;;  %v265_v48 = vpop.f32.mrb[6].mxu1 }
  0xe8   :  { %v2165_v49 = vadd.f32 %v192_v40, %v45_v58  ;;  %v194_v50 = vpop.f32.mrb[7].mxu0  ;;  %v2168_v51 = vadd.f32 %v265_v48, %v2137_v54  ;;  %v267_v52 = vpop.f32.mrb[7].mxu1 }
  0xe9   :  { %2634 = vst [vmem:[#allocation3_spill] sm:$0xff] %v2163_v47  ;;  %v2170_v53 = vadd.f32 %v194_v50, %v49_v61  ;;  %v2173_v62 = vadd.f32 %v267_v52, %v2143_v57 }
  0xea   :  { %2635 = vst [vmem:[#allocation4_spill] sm:$0xff] %v2165_v49  ;;  %2636 = vst [vmem:[#allocation5_spill] sm:$0xff] %v2168_v51 }
  0xeb   :  { %2637 = vst [vmem:[#allocation6_spill] sm:$0xff] %v2170_v53  ;;  %2638 = vst [vmem:[#allocation7_spill] sm:$0xff] %v2173_v62 }
  0xed   :  { %v198_v63 = vpop.f32.mrb[8].mxu0  ;;  %v271_v2 = vpop.f32.mrb[8].mxu1 }
  0xee   :  { %v2175_v4 = vadd.f32 %v198_v63, %v45_v58  ;;  %v200_v7 = vpop.f32.mrb[9].mxu0  ;;  %v2178_v8 = vadd.f32 %v271_v2, %v2137_v54  ;;  %v273_v10 = vpop.f32.mrb[9].mxu1 }
  0xef   :  { %v2180_v22 = vadd.f32 %v200_v7, %v49_v61  ;;  %v202_v40 = vpop.f32.mrb[10].mxu0  ;;  %v2183_v48 = vadd.f32 %v273_v10, %v2143_v57  ;;  %v275_v50 = vpop.f32.mrb[10].mxu1 }
  0xf0   :  { %2639 = vst [vmem:[#allocation8_spill] sm:$0xff] %v2175_v4  ;;  %2640 = vst [vmem:[#allocation9_spill] sm:$0xff] %v2178_v8  ;;  %v2185_v1 = vadd.f32 %v202_v40, %v45_v58  ;;  %v204_v52 = vpop.f32.mrb[11].mxu0  ;;  %v2188_v62 = vadd.f32 %v275_v50, %v2137_v54  ;;  %v277_v63 = vpop.f32.mrb[11].mxu1 }
  0xf1   :  { %2641 = vst [vmem:[#allocation10_spill] sm:$0xff] %v2180_v22  ;;  %2642 = vst [vmem:[#allocation11_spill] sm:$0xff] %v2183_v48  ;;  %v2190_v4 = vadd.f32 %v204_v52, %v49_v61  ;;  %v2193_v2 = vadd.f32 %v277_v63, %v2143_v57 }
  0xf2   :  { %2643 = vst [vmem:[#allocation12_spill] sm:$0xff] %v2185_v1  ;;  %2644 = vst [vmem:[#allocation13_spill] sm:$0xff] %v2188_v62 }
  0xf3   :  { %2645 = vst [vmem:[#allocation14_spill] sm:$0xff] %v2190_v4  ;;  %2646 = vst [vmem:[#allocation15_spill] sm:$0xff] %v2193_v2 }
  0xf5   :  { %v208_v8 = vpop.f32.mrb[12].mxu0  ;;  %v281_v7 = vpop.f32.mrb[12].mxu1 }
  0xf6   :  { %v2195_v22 = vadd.f32 %v208_v8, %v45_v58  ;;  %v210_v53 = vpop.f32.mrb[13].mxu0  ;;  %v2198_v10 = vadd.f32 %v281_v7, %v2137_v54  ;;  %v283_v40 = vpop.f32.mrb[13].mxu1 }
  0xf7   :  { %v2200_v1 = vadd.f32 %v210_v53, %v49_v61  ;;  %v212_v48 = vpop.f32.mrb[14].mxu0  ;;  %v2203_v50 = vadd.f32 %v283_v40, %v2143_v57  ;;  %v285_v52 = vpop.f32.mrb[14].mxu1  ;;  %v179_v53 = vadd.f32 %v2139_v55, %v45_v58  ;;  %v181_v40 = vadd.f32 %v180_v59, %v49_v61 }
  0xf8   :  { %2647 = vst [vmem:[#allocation16_spill] sm:$0xff] %v2195_v22  ;;  %2648 = vst [vmem:[#allocation17_spill] sm:$0xff] %v2198_v10  ;;  %v2205_v4 = vadd.f32 %v212_v48, %v45_v58  ;;  %v214_v63 = vpop.f32.mrb[15].mxu0  ;;  %v2208_v2 = vadd.f32 %v285_v52, %v2137_v54  ;;  %v287_v8 = vpop.f32.mrb[15].mxu1 }
  0xf9   :  { %2649 = vst [vmem:[#allocation18_spill] sm:$0xff] %v2200_v1  ;;  %2650 = vst [vmem:[#allocation19_spill] sm:$0xff] %v2203_v50  ;;  %v2210_v22 = vadd.f32 %v214_v63, %v49_v61  ;;  %v2213_v7 = vadd.f32 %v287_v8, %v2143_v57  ;;  %v252_v1 = vadd.f32 %v2141_v56, %v2137_v54 }
  0xfa   :  { %2651 = vst [vmem:[#allocation20_spill] sm:$0xff] %v2205_v4  ;;  %2652 = vst [vmem:[#allocation21_spill] sm:$0xff] %v2208_v2  ;;  %v254_v50 = vadd.f32 %v253_v60, %v2143_v57 }
  0xfb   :  { %2653 = vst [vmem:[#allocation22_spill] sm:$0xff] %v2210_v22  ;;  %2654 = vst [vmem:[#allocation23_spill] sm:$0xff] %v2213_v7 }
  0xfd   :  { %v555_v48 = vpop.f32.mrb[16].mxu0  ;;  %v596_v4 = vpop.f32.mrb[16].mxu1 }
  0xfe   :  { %v603_v10 = vadd.f32 %v555_v48, %v179_v53  ;;  %v605_v62 = vadd.f32 %v596_v4, %v252_v1  ;;  %v557_v52 = vpop.f32.mrb[17].mxu0  ;;  %v598_v2 = vpop.f32.mrb[17].mxu1 }
  0xff   :  { %v604_v51 = vadd.f32 %v557_v52, %v181_v40  ;;  %v606_v63 = vadd.f32 %v598_v2, %v254_v50  ;;  %v559_v22 = vpop.f32.mrb[18].mxu0  ;;  %v600_v49 = vpop.f32.mrb[18].mxu1 }
 0x100   :  { %v607_v8 = vmul.f32 0.5, %v603_v10  ;;  %v560_v7 = vpop.f32.mrb[19].mxu0  ;;  %v601_v47 = vpop.f32.mrb[19].mxu1  ;;  %v609_v54 = vmul.f32 0.5, %v605_v62 }
 0x101   :  { %v608_v55 = vmul.f32 0.5, %v604_v51  ;;  %v2655_v7 = vmov 0  }
 0x102   :  { %1700 = vtanh.f32 %v607_v8 }
 0x103   :  { %1702 = vtanh.f32 %v608_v55 }
 0x104   :  { %1704 = vtanh.f32 %v606_v63 }
 0x105   :  { %1706 = vtanh.f32 %v609_v54 }
 0x10c   :  { %v1701_v56 = vpop.eup %1700 }
 0x10d   :  { %v613_v57 = vmul.f32 0.5, %v1701_v56  ;;  %v1703_v58 = vpop.eup %1702 }
 0x10e   :  { %v614_v1 = vmul.f32 0.5, %v1703_v58  ;;  %v1705_v60 = vpop.eup %1704 }
 0x10f   :  { %v616_v59 = vadd.f32 0.5, %v613_v57  ;;  %v1707_v47 = vpop.eup %1706 }
 0x110   :  { %v617_v61 = vadd.f32 0.5, %v614_v1  ;;  %v615_v49 = vmul.f32 0.5, %v1707_v47 }
 0x111   :  { %v621_v4 = vmul.f32 %v1705_v60, %v616_v59 }
 0x112   :  { %v620_v2 = vmul.f32 0.0, %v617_v61  ;;  %v618_v51 = vadd.f32 0.5, %v615_v49 }
 0x114   :  { %v2219_v22 = vadd.f32 %v621_v4, %v620_v2 }
 0x116   :  { %1708 = vtanh.f32 %v2219_v22 }
 0x120   :  { %v1709_v10 = vpop.eup %1708 }
 0x121   :  { %v624_v50 = vmul.f32 %v1709_v10, %v618_v51 }
 0x123   :  { %v632_v62 = vpack.c.bf16 %v624_v50, %v624_v50 }
 0x125   :  { %666 = vmatmul.mubr.bf16.vlgmr.msra.gmra.mrb[20].mxu0 %v632_v62  ;;  %707 = vmatmul.mubr.bf16.vlgmr.msra.gmra.mrb[20].mxu1 %v632_v62 }
 0x126   :  { %746 = vmatpush1.bf16.msra.mxu0 %v1892_v14  ;;  %787 = vmatpush1.bf16.msra.mxu1 %v1898_v15 }
 0x127   :  { %747 = vmatprep.subr.bf16.mxu0 %v1904_v16  ;;  %788 = vmatprep.subr.bf16.mxu1 %v1911_v17 }
 0x128   :  { %777 = vmatprep.mubr.bf16.mxu0 %v2655_v7  ;;  %818 = vmatprep.mubr.bf16.mxu1 %v2655_v7 }
 0x12a   :  { %748 = vmatpush1.bf16.msra.mxu0 %v1916_v18  ;;  %789 = vmatpush1.bf16.msra.mxu1 %v1923_v19 }
 0x12b   :  { %749 = vmatprep.subr.bf16.mxu0 %v1930_v20  ;;  %790 = vmatprep.subr.bf16.mxu1 %v1937_v21 }
 0x12e   :  { %750 = vmatpush1.bf16.msra.mxu0 %v1945_v23  ;;  %791 = vmatpush1.bf16.msra.mxu1 %v1952_v24 }
 0x12f   :  { %751 = vmatprep.subr.bf16.mxu0 %v1959_v25  ;;  %792 = vmatprep.subr.bf16.mxu1 %v1964_v26 }
 0x132   :  { %752 = vmatpush1.bf16.msra.mxu0 %v1971_v27  ;;  %793 = vmatpush1.bf16.msra.mxu1 %v1978_v28 }
 0x133   :  { %753 = vmatprep.subr.bf16.mxu0 %v1985_v29  ;;  %794 = vmatprep.subr.bf16.mxu1 %v1990_v30 }
 0x136   :  { %754 = vmatpush1.bf16.msra.mxu0 %v2000_v32  ;;  %795 = vmatpush1.bf16.msra.mxu1 %v2007_v33 }
 0x137   :  { %755 = vmatprep.subr.bf16.mxu0 %v2012_v34  ;;  %796 = vmatprep.subr.bf16.mxu1 %v2019_v35 }
 0x13a   :  { %756 = vmatpush1.bf16.msra.mxu0 %v2026_v36  ;;  %797 = vmatpush1.bf16.msra.mxu1 %v2031_v37 }
 0x13b   :  { %757 = vmatprep.subr.bf16.mxu0 %v2038_v38  ;;  %798 = vmatprep.subr.bf16.mxu1 %v2045_v39 }
 0x13e   :  { %758 = vmatpush1.bf16.msra.mxu0 %v2057_v41  ;;  %799 = vmatpush1.bf16.msra.mxu1 %v2062_v42 }
 0x13f   :  { %759 = vmatprep.subr.bf16.mxu0 %v2069_v43  ;;  %800 = vmatprep.subr.bf16.mxu1 %v2074_v44 }
 0x142   :  { %760 = vmatpush1.bf16.msra.mxu0 %v2083_v45  ;;  %801 = vmatpush1.bf16.msra.mxu1 %v2088_v46 }
 0x143   :  { %857 = vmatprep.subr.bf16.mxu0 %v1882_v12  ;;  %898 = vmatprep.subr.bf16.mxu1 %v1887_v13 }
 0x1f8   :  { %v667_v53 = vpop.f32.mrb[20].mxu0  ;;  %v708_v40 = vpop.f32.mrb[20].mxu1 }
 0x1f9   :  { %v715_v48 = vadd.f32 %v667_v53, %v2145_v0  ;;  %v717_v52 = vadd.f32 %v708_v40, %v2148_v3  ;;  %v669_v63 = vpop.f32.mrb[21].mxu0  ;;  %v710_v8 = vpop.f32.mrb[21].mxu1 }
 0x1fa   :  { %v716_v55 = vadd.f32 %v669_v63, %v2150_v5  ;;  %v718_v54 = vadd.f32 %v710_v8, %v2153_v6  ;;  %v671_v56 = vpop.f32.mrb[22].mxu0  ;;  %v712_v57 = vpop.f32.mrb[22].mxu1 }
 0x1fb   :  { %v719_v58 = vmul.f32 0.5, %v715_v48  ;;  %v672_v59 = vpop.f32.mrb[23].mxu0  ;;  %v713_v1 = vpop.f32.mrb[23].mxu1  ;;  %v721_v61 = vmul.f32 0.5, %v717_v52 }
 0x1fc   :  { %v720_v60 = vmul.f32 0.5, %v716_v55 }
 0x1fd   :  { %1710 = vtanh.f32 %v719_v58  ;;  %v2656_v58 = vld [vmem:[#allocation3_spill] sm:$0xff] }
 0x1fe   :  { %1712 = vtanh.f32 %v720_v60 }
 0x1ff   :  { %1714 = vtanh.f32 %v718_v54 }
 0x200   :  { %1716 = vtanh.f32 %v721_v61 }
 0x207   :  { %v1711_v4 = vpop.eup %1710 }
 0x208   :  { %v725_v0 = vmul.f32 0.5, %v1711_v4  ;;  %v1713_v2 = vpop.eup %1712 }
 0x209   :  { %v726_v47 = vmul.f32 0.5, %v1713_v2  ;;  %v1715_v49 = vpop.eup %1714 }
 0x20a   :  { %v728_v3 = vadd.f32 0.5, %v725_v0  ;;  %v1717_v50 = vpop.eup %1716 }
 0x20b   :  { %v729_v5 = vadd.f32 0.5, %v726_v47  ;;  %v727_v62 = vmul.f32 0.5, %v1717_v50 }
 0x20c   :  { %v733_v51 = vmul.f32 %v1715_v49, %v728_v3 }
 0x20d   :  { %v732_v6 = vmul.f32 %v729_v5, %v2219_v22  ;;  %v730_v53 = vadd.f32 0.5, %v727_v62 }
 0x20f   :  { %v2261_v10 = vadd.f32 %v733_v51, %v732_v6 }
 0x211   :  { %1718 = vtanh.f32 %v2261_v10 }
 0x21b   :  { %v1719_v40 = vpop.eup %1718 }
 0x21c   :  { %v736_v48 = vmul.f32 %v1719_v40, %v730_v53 }
 0x21e   :  { %v744_v52 = vpack.c.bf16 %v736_v48, %v736_v48 }
 0x220   :  { %778 = vmatmul.mubr.bf16.vlgmr.msra.gmra.mrb[24].mxu0 %v744_v52  ;;  %819 = vmatmul.mubr.bf16.vlgmr.msra.gmra.mrb[24].mxu1 %v744_v52 }
 0x221   :  { %858 = vmatpush1.bf16.msra.mxu0 %v1892_v14  ;;  %899 = vmatpush1.bf16.msra.mxu1 %v1898_v15 }
 0x222   :  { %859 = vmatprep.subr.bf16.mxu0 %v1904_v16  ;;  %900 = vmatprep.subr.bf16.mxu1 %v1911_v17 }
 0x223   :  { %889 = vmatprep.mubr.bf16.mxu0 %v2655_v7  ;;  %930 = vmatprep.mubr.bf16.mxu1 %v2655_v7 }
 0x225   :  { %860 = vmatpush1.bf16.msra.mxu0 %v1916_v18  ;;  %901 = vmatpush1.bf16.msra.mxu1 %v1923_v19 }
 0x226   :  { %861 = vmatprep.subr.bf16.mxu0 %v1930_v20  ;;  %902 = vmatprep.subr.bf16.mxu1 %v1937_v21 }
 0x229   :  { %862 = vmatpush1.bf16.msra.mxu0 %v1945_v23  ;;  %903 = vmatpush1.bf16.msra.mxu1 %v1952_v24 }
 0x22a   :  { %863 = vmatprep.subr.bf16.mxu0 %v1959_v25  ;;  %904 = vmatprep.subr.bf16.mxu1 %v1964_v26 }
 0x22d   :  { %864 = vmatpush1.bf16.msra.mxu0 %v1971_v27  ;;  %905 = vmatpush1.bf16.msra.mxu1 %v1978_v28 }
 0x22e   :  { %865 = vmatprep.subr.bf16.mxu0 %v1985_v29  ;;  %906 = vmatprep.subr.bf16.mxu1 %v1990_v30 }
 0x231   :  { %866 = vmatpush1.bf16.msra.mxu0 %v2000_v32  ;;  %907 = vmatpush1.bf16.msra.mxu1 %v2007_v33 }
 0x232   :  { %867 = vmatprep.subr.bf16.mxu0 %v2012_v34  ;;  %908 = vmatprep.subr.bf16.mxu1 %v2019_v35 }
 0x235   :  { %868 = vmatpush1.bf16.msra.mxu0 %v2026_v36  ;;  %909 = vmatpush1.bf16.msra.mxu1 %v2031_v37 }
 0x236   :  { %869 = vmatprep.subr.bf16.mxu0 %v2038_v38  ;;  %910 = vmatprep.subr.bf16.mxu1 %v2045_v39 }
 0x239   :  { %870 = vmatpush1.bf16.msra.mxu0 %v2057_v41  ;;  %911 = vmatpush1.bf16.msra.mxu1 %v2062_v42 }
 0x23a   :  { %871 = vmatprep.subr.bf16.mxu0 %v2069_v43  ;;  %912 = vmatprep.subr.bf16.mxu1 %v2074_v44 }
 0x23d   :  { %872 = vmatpush1.bf16.msra.mxu0 %v2083_v45  ;;  %913 = vmatpush1.bf16.msra.mxu1 %v2088_v46 }
 0x23e   :  { %969 = vmatprep.subr.bf16.mxu0 %v1882_v12  ;;  %1010 = vmatprep.subr.bf16.mxu1 %v1887_v13 }
 0x2f3   :  { %v779_v22 = vpop.f32.mrb[24].mxu0  ;;  %v820_v63 = vpop.f32.mrb[24].mxu1 }
 0x2f4   :  { %v827_v8 = vadd.f32 %v779_v22, %v2155_v9  ;;  %v829_v55 = vadd.f32 %v820_v63, %v2158_v11  ;;  %v781_v54 = vpop.f32.mrb[25].mxu0  ;;  %v822_v56 = vpop.f32.mrb[25].mxu1 }
 0x2f5   :  { %v828_v57 = vadd.f32 %v781_v54, %v2160_v31  ;;  %v830_v59 = vadd.f32 %v822_v56, %v2656_v58  ;;  %v783_v1 = vpop.f32.mrb[26].mxu0  ;;  %v824_v60 = vpop.f32.mrb[26].mxu1  ;;  %v2658_v56 = vld [vmem:[#allocation5_spill] sm:$0xff] }
 0x2f6   :  { %v831_v61 = vmul.f32 0.5, %v827_v8  ;;  %v784_v4 = vpop.f32.mrb[27].mxu0  ;;  %v825_v0 = vpop.f32.mrb[27].mxu1  ;;  %v833_v3 = vmul.f32 0.5, %v829_v55  ;;  %v2657_v55 = vld [vmem:[#allocation4_spill] sm:$0xff]  ;;  %v2659_v1 = vld [vmem:[#allocation6_spill] sm:$0xff] }
 0x2f7   :  { %v832_v2 = vmul.f32 0.5, %v828_v57 }
 0x2f8   :  { %1720 = vtanh.f32 %v831_v61  ;;  %v2660_v61 = vld [vmem:[#allocation7_spill] sm:$0xff] }
 0x2f9   :  { %1722 = vtanh.f32 %v832_v2 }
 0x2fa   :  { %1724 = vtanh.f32 %v830_v59 }
 0x2fb   :  { %1726 = vtanh.f32 %v833_v3 }
 0x302   :  { %v1721_v47 = vpop.eup %1720 }
 0x303   :  { %v837_v9 = vmul.f32 0.5, %v1721_v47  ;;  %v1723_v49 = vpop.eup %1722 }
 0x304   :  { %v838_v5 = vmul.f32 0.5, %v1723_v49  ;;  %v1725_v51 = vpop.eup %1724 }
 0x305   :  { %v840_v11 = vadd.f32 0.5, %v837_v9  ;;  %v1727_v53 = vpop.eup %1726 }
 0x306   :  { %v841_v31 = vadd.f32 0.5, %v838_v5  ;;  %v839_v40 = vmul.f32 0.5, %v1727_v53 }
 0x307   :  { %v845_v6 = vmul.f32 %v1725_v51, %v840_v11 }
 0x308   :  { %v844_v50 = vmul.f32 %v841_v31, %v2261_v10  ;;  %v842_v48 = vadd.f32 0.5, %v839_v40 }
 0x30a   :  { %v2303_v62 = vadd.f32 %v845_v6, %v844_v50 }
 0x30c   :  { %1728 = vtanh.f32 %v2303_v62 }
 0x316   :  { %v1729_v52 = vpop.eup %1728 }
 0x317   :  { %v848_v22 = vmul.f32 %v1729_v52, %v842_v48 }
 0x319   :  { %v856_v63 = vpack.c.bf16 %v848_v22, %v848_v22 }
 0x31b   :  { %890 = vmatmul.mubr.bf16.vlgmr.msra.gmra.mrb[28].mxu0 %v856_v63  ;;  %931 = vmatmul.mubr.bf16.vlgmr.msra.gmra.mrb[28].mxu1 %v856_v63 }
 0x31c   :  { %970 = vmatpush1.bf16.msra.mxu0 %v1892_v14  ;;  %1011 = vmatpush1.bf16.msra.mxu1 %v1898_v15 }
 0x31d   :  { %971 = vmatprep.subr.bf16.mxu0 %v1904_v16  ;;  %1012 = vmatprep.subr.bf16.mxu1 %v1911_v17 }
 0x31e   :  { %1001 = vmatprep.mubr.bf16.mxu0 %v2655_v7  ;;  %1042 = vmatprep.mubr.bf16.mxu1 %v2655_v7 }
 0x320   :  { %972 = vmatpush1.bf16.msra.mxu0 %v1916_v18  ;;  %1013 = vmatpush1.bf16.msra.mxu1 %v1923_v19 }
 0x321   :  { %973 = vmatprep.subr.bf16.mxu0 %v1930_v20  ;;  %1014 = vmatprep.subr.bf16.mxu1 %v1937_v21 }
 0x324   :  { %974 = vmatpush1.bf16.msra.mxu0 %v1945_v23  ;;  %1015 = vmatpush1.bf16.msra.mxu1 %v1952_v24 }
 0x325   :  { %975 = vmatprep.subr.bf16.mxu0 %v1959_v25  ;;  %1016 = vmatprep.subr.bf16.mxu1 %v1964_v26 }
 0x328   :  { %976 = vmatpush1.bf16.msra.mxu0 %v1971_v27  ;;  %1017 = vmatpush1.bf16.msra.mxu1 %v1978_v28 }
 0x329   :  { %977 = vmatprep.subr.bf16.mxu0 %v1985_v29  ;;  %1018 = vmatprep.subr.bf16.mxu1 %v1990_v30 }
 0x32c   :  { %978 = vmatpush1.bf16.msra.mxu0 %v2000_v32  ;;  %1019 = vmatpush1.bf16.msra.mxu1 %v2007_v33 }
 0x32d   :  { %979 = vmatprep.subr.bf16.mxu0 %v2012_v34  ;;  %1020 = vmatprep.subr.bf16.mxu1 %v2019_v35 }
 0x330   :  { %980 = vmatpush1.bf16.msra.mxu0 %v2026_v36  ;;  %1021 = vmatpush1.bf16.msra.mxu1 %v2031_v37 }
 0x331   :  { %981 = vmatprep.subr.bf16.mxu0 %v2038_v38  ;;  %1022 = vmatprep.subr.bf16.mxu1 %v2045_v39 }
 0x334   :  { %982 = vmatpush1.bf16.msra.mxu0 %v2057_v41  ;;  %1023 = vmatpush1.bf16.msra.mxu1 %v2062_v42 }
 0x335   :  { %983 = vmatprep.subr.bf16.mxu0 %v2069_v43  ;;  %1024 = vmatprep.subr.bf16.mxu1 %v2074_v44 }
 0x338   :  { %984 = vmatpush1.bf16.msra.mxu0 %v2083_v45  ;;  %1025 = vmatpush1.bf16.msra.mxu1 %v2088_v46 }
 0x339   :  { %1081 = vmatprep.subr.bf16.mxu0 %v1882_v12  ;;  %1122 = vmatprep.subr.bf16.mxu1 %v1887_v13 }
 0x3ee   :  { %v891_v10 = vpop.f32.mrb[28].mxu0  ;;  %v932_v8 = vpop.f32.mrb[28].mxu1 }
 0x3ef   :  { %v939_v54 = vadd.f32 %v891_v10, %v2657_v55  ;;  %v941_v57 = vadd.f32 %v932_v8, %v2658_v56  ;;  %v893_v58 = vpop.f32.mrb[29].mxu0  ;;  %v934_v59 = vpop.f32.mrb[29].mxu1 }
 0x3f0   :  { %v940_v60 = vadd.f32 %v893_v58, %v2659_v1  ;;  %v942_v4 = vadd.f32 %v934_v59, %v2660_v61  ;;  %v895_v0 = vpop.f32.mrb[30].mxu0  ;;  %v936_v2 = vpop.f32.mrb[30].mxu1 }
 0x3f1   :  { %v943_v3 = vmul.f32 0.5, %v939_v54  ;;  %v896_v47 = vpop.f32.mrb[31].mxu0  ;;  %v937_v9 = vpop.f32.mrb[31].mxu1  ;;  %v945_v13 = vmul.f32 0.5, %v941_v57 }
 0x3f2   :  { %v944_v12 = vmul.f32 0.5, %v940_v60 }
 0x3f3   :  { %1730 = vtanh.f32 %v943_v3 }
 0x3f4   :  { %1732 = vtanh.f32 %v944_v12 }
 0x3f5   :  { %1734 = vtanh.f32 %v942_v4 }
 0x3f6   :  { %1736 = vtanh.f32 %v945_v13 }
 0x3fd   :  { %v1731_v49 = vpop.eup %1730 }
 0x3fe   :  { %v949_v11 = vmul.f32 0.5, %v1731_v49  ;;  %v1733_v5 = vpop.eup %1732 }
 0x3ff   :  { %v950_v31 = vmul.f32 0.5, %v1733_v5  ;;  %v1735_v6 = vpop.eup %1734 }
 0x400   :  { %v952_v51 = vadd.f32 0.5, %v949_v11  ;;  %v1737_v52 = vpop.eup %1736 }
 0x401   :  { %v953_v50 = vadd.f32 0.5, %v950_v31  ;;  %v951_v22 = vmul.f32 0.5, %v1737_v52  ;;  %v2403_v31 = vld [vmem:[%s2627_s2] ss:$16 sps:$4 sm:$0xff]   ;;  %v2441_v52 = vld [vmem:[%s2627_s2 + $0x44] ss:$16 sps:$4 sm:$0xff]  }
 0x402   :  { %v957_v53 = vmul.f32 %v1735_v6, %v952_v51  ;;  %v2409_v6 = vld [vmem:[%s2627_s2 + $0x8] ss:$16 sps:$4 sm:$0xff]  }
 0x403   :  { %v956_v40 = vmul.f32 %v953_v50, %v2303_v62  ;;  %v954_v63 = vadd.f32 0.5, %v951_v22  ;;  %v2415_v50 = vld [vmem:[%s2627_s2 + $0x24] ss:$16 sps:$4 sm:$0xff]   ;;  %v2447_v22 = vld [vmem:[%s2627_s2 + $0x4c] ss:$16 sps:$4 sm:$0xff]  }
 0x405   :  { %v2345_v48 = vadd.f32 %v957_v53, %v956_v40  ;;  %v2421_v53 = vld [vmem:[%s2627_s2 + $0x2c] ss:$16 sps:$4 sm:$0xff]   ;;  %v2429_v40 = vld [vmem:[%s2627_s2 + $0x20] ss:$16 sps:$4 sm:$0xff]  }
 0x407   :  { %1738 = vtanh.f32 %v2345_v48 }
 0x411   :  { %v1739_v10 = vpop.eup %1738 }
 0x412   :  { %v960_v8 = vmul.f32 %v1739_v10, %v954_v63  ;;  %v2453_v63 = vld [vmem:[%s2627_s2 + $0x40] ss:$16 sps:$4 sm:$0xff]   ;;  %v2459_v10 = vld [vmem:[%s2627_s2 + $0x48] ss:$16 sps:$4 sm:$0xff]  }
 0x414   :  { %v968_v55 = vpack.c.bf16 %v960_v8, %v960_v8  ;;  %v2465_v8 = vld [vmem:[%s2627_s2 + $0x64] ss:$16 sps:$4 sm:$0xff]  }
 0x416   :  { %1002 = vmatmul.mubr.bf16.vlgmr.msra.gmra.mrb[32].mxu0 %v968_v55  ;;  %1043 = vmatmul.mubr.bf16.vlgmr.msra.gmra.mrb[32].mxu1 %v968_v55  ;;  %v2471_v55 = vld [vmem:[%s2627_s2 + $0x6c] ss:$16 sps:$4 sm:$0xff]  }
 0x417   :  { %1082 = vmatpush1.bf16.msra.mxu0 %v1892_v14  ;;  %1123 = vmatpush1.bf16.msra.mxu1 %v1898_v15  ;;  %v2383_v14 = vld [vmem:[%s2627_s2 + $0x4] ss:$16 sps:$4 sm:$0xff]   ;;  %v2389_v15 = vld [vmem:[%s2627_s2 + $0xc] ss:$16 sps:$4 sm:$0xff]  }
 0x418   :  { %1083 = vmatprep.subr.bf16.mxu0 %v1904_v16  ;;  %1124 = vmatprep.subr.bf16.mxu1 %v1911_v17 }
 0x419   :  { %1113 = vmatprep.mubr.bf16.mxu0 %v2655_v7  ;;  %1154 = vmatprep.mubr.bf16.mxu1 %v2655_v7 }
 0x41b   :  { %1084 = vmatpush1.bf16.msra.mxu0 %v1916_v18  ;;  %1125 = vmatpush1.bf16.msra.mxu1 %v1923_v19  ;;  %v2661_v18 = vld [vmem:[#allocation8_spill] sm:$0xff] }
 0x41c   :  { %1085 = vmatprep.subr.bf16.mxu0 %v1930_v20  ;;  %1126 = vmatprep.subr.bf16.mxu1 %v1937_v21  ;;  %v2662_v20 = vld [vmem:[#allocation9_spill] sm:$0xff] }
 0x41f   :  { %1086 = vmatpush1.bf16.msra.mxu0 %v1945_v23  ;;  %1127 = vmatpush1.bf16.msra.mxu1 %v1952_v24 }
 0x420   :  { %1087 = vmatprep.subr.bf16.mxu0 %v1959_v25  ;;  %1128 = vmatprep.subr.bf16.mxu1 %v1964_v26  ;;  %v2663_v25 = vld [vmem:[#allocation10_spill] sm:$0xff] }
 0x423   :  { %1088 = vmatpush1.bf16.msra.mxu0 %v1971_v27  ;;  %1129 = vmatpush1.bf16.msra.mxu1 %v1978_v28  ;;  %v2664_v27 = vld [vmem:[#allocation11_spill] sm:$0xff] }
 0x424   :  { %1089 = vmatprep.subr.bf16.mxu0 %v1985_v29  ;;  %1130 = vmatprep.subr.bf16.mxu1 %v1990_v30 }
 0x427   :  { %1090 = vmatpush1.bf16.msra.mxu0 %v2000_v32  ;;  %1131 = vmatpush1.bf16.msra.mxu1 %v2007_v33 }
 0x428   :  { %1091 = vmatprep.subr.bf16.mxu0 %v2012_v34  ;;  %1132 = vmatprep.subr.bf16.mxu1 %v2019_v35 }
 0x42b   :  { %1092 = vmatpush1.bf16.msra.mxu0 %v2026_v36  ;;  %1133 = vmatpush1.bf16.msra.mxu1 %v2031_v37 }
 0x42c   :  { %1093 = vmatprep.subr.bf16.mxu0 %v2038_v38  ;;  %1134 = vmatprep.subr.bf16.mxu1 %v2045_v39 }
 0x42f   :  { %1094 = vmatpush1.bf16.msra.mxu0 %v2057_v41  ;;  %1135 = vmatpush1.bf16.msra.mxu1 %v2062_v42 }
 0x430   :  { %1095 = vmatprep.subr.bf16.mxu0 %v2069_v43  ;;  %1136 = vmatprep.subr.bf16.mxu1 %v2074_v44 }
 0x433   :  { %1096 = vmatpush1.bf16.msra.mxu0 %v2083_v45  ;;  %1137 = vmatpush1.bf16.msra.mxu1 %v2088_v46 }
 0x434   :  { %1193 = vmatprep.subr.bf16.mxu0 %v2383_v14  ;;  %1234 = vmatprep.subr.bf16.mxu1 %v2389_v15 }
 0x4e9   :  { %v1003_v16 = vpop.f32.mrb[32].mxu0  ;;  %v1044_v17 = vpop.f32.mrb[32].mxu1 }
 0x4ea   :  { %v1051_v19 = vadd.f32 %v1003_v16, %v2661_v18  ;;  %v1053_v21 = vadd.f32 %v1044_v17, %v2662_v20  ;;  %v1005_v23 = vpop.f32.mrb[33].mxu0  ;;  %v1046_v24 = vpop.f32.mrb[33].mxu1  ;;  %v2477_v16 = vld [vmem:[%s2627_s2 + $0x60] ss:$16 sps:$4 sm:$0xff]   ;;  %v2483_v17 = vld [vmem:[%s2627_s2 + $0x68] ss:$16 sps:$4 sm:$0xff]  }
 0x4eb   :  { %v1052_v26 = vadd.f32 %v1005_v23, %v2663_v25  ;;  %v1054_v28 = vadd.f32 %v1046_v24, %v2664_v27  ;;  %v1007_v29 = vpop.f32.mrb[34].mxu0  ;;  %v1048_v30 = vpop.f32.mrb[34].mxu1  ;;  %v2489_v18 = vld [vmem:[%s2627_s2 + $0x84] ss:$16 sps:$4 sm:$0xff]  }
 0x4ec   :  { %v1055_v62 = vmul.f32 0.5, %v1051_v19  ;;  %v1008_v54 = vpop.f32.mrb[35].mxu0  ;;  %v1049_v56 = vpop.f32.mrb[35].mxu1  ;;  %v1057_v58 = vmul.f32 0.5, %v1053_v21  ;;  %v2495_v19 = vld [vmem:[%s2627_s2 + $0x8c] ss:$16 sps:$4 sm:$0xff]  }
 0x4ed   :  { %v1056_v57 = vmul.f32 0.5, %v1052_v26 }
 0x4ee   :  { %1740 = vtanh.f32 %v1055_v62 }
 0x4ef   :  { %1742 = vtanh.f32 %v1056_v57 }
 0x4f0   :  { %1744 = vtanh.f32 %v1054_v28 }
 0x4f1   :  { %1746 = vtanh.f32 %v1057_v58 }
 0x4f8   :  { %v1741_v59 = vpop.eup %1740 }
 0x4f9   :  { %v1061_v1 = vmul.f32 0.5, %v1741_v59  ;;  %v1743_v60 = vpop.eup %1742 }
 0x4fa   :  { %v1062_v4 = vmul.f32 0.5, %v1743_v60  ;;  %v1745_v0 = vpop.eup %1744 }
 0x4fb   :  { %v1064_v61 = vadd.f32 0.5, %v1061_v1  ;;  %v1747_v12 = vpop.eup %1746 }
 0x4fc   :  { %v1065_v2 = vadd.f32 0.5, %v1062_v4  ;;  %v1063_v13 = vmul.f32 0.5, %v1747_v12  ;;  %v1799_v4 = vld [vmem:[%s2627_s2 + $0x88] ss:$16 sps:$4 sm:$0xff]   ;;  %v1805_v12 = vld [vmem:[%s2627_s2 + $0xcc] ss:$16 sps:$4 sm:$0xff]  }
 0x4fd   :  { %v1069_v3 = vmul.f32 %v1745_v0, %v1064_v61  ;;  %v1800_v0 = vld [vmem:[%s2627_s2 + $0xa4] ss:$16 sps:$4 sm:$0xff]  }
 0x4fe   :  { %v1068_v47 = vmul.f32 %v1065_v2, %v2345_v48  ;;  %v1066_v49 = vadd.f32 0.5, %v1063_v13  ;;  %v2435_v48 = vld [vmem:[%s2627_s2 + $0x28] ss:$16 sps:$4 sm:$0xff]   ;;  %v1801_v2 = vld [vmem:[%s2627_s2 + $0xac] ss:$16 sps:$4 sm:$0xff]  }
 0x4ff   :  { %v1806_v13 = vld [vmem:[%s2627_s2 + $0xc0] ss:$16 sps:$4 sm:$0xff]  }
 0x500   :  { %v2397_v9 = vadd.f32 %v1069_v3, %v1068_v47  ;;  %v1802_v3 = vld [vmem:[%s2627_s2 + $0xa0] ss:$16 sps:$4 sm:$0xff]   ;;  %v1803_v47 = vld [vmem:[%s2627_s2 + $0xa8] ss:$16 sps:$4 sm:$0xff]  }
 0x502   :  { %1748 = vtanh.f32 %v2397_v9 }
 0x50c   :  { %v1749_v11 = vpop.eup %1748 }
 0x50d   :  { %v1072_v5 = vmul.f32 %v1749_v11, %v1066_v49  ;;  %v1807_v49 = vld [vmem:[%s2627_s2 + $0xc8] ss:$16 sps:$4 sm:$0xff]   ;;  %v1808_v11 = vld [vmem:[%s2627_s2 + $0xe4] ss:$16 sps:$4 sm:$0xff]  }
 0x50f   :  { %v1080_v51 = vpack.c.bf16 %v1072_v5, %v1072_v5  ;;  %v1809_v5 = vld [vmem:[%s2627_s2 + $0xec] ss:$16 sps:$4 sm:$0xff]  }
 0x511   :  { %1114 = vmatmul.mubr.bf16.vlgmr.msra.gmra.mrb[36].mxu0 %v1080_v51  ;;  %1155 = vmatmul.mubr.bf16.vlgmr.msra.gmra.mrb[36].mxu1 %v1080_v51  ;;  %v1810_v51 = vld [vmem:[%s2627_s2 + $0xe0] ss:$16 sps:$4 sm:$0xff]  }
 0x512   :  { %1194 = vmatpush1.bf16.msra.mxu0 %v2403_v31  ;;  %1235 = vmatpush1.bf16.msra.mxu1 %v2409_v6 }
 0x513   :  { %1195 = vmatprep.subr.bf16.mxu0 %v2415_v50  ;;  %1236 = vmatprep.subr.bf16.mxu1 %v2421_v53 }
 0x514   :  { %1225 = vmatprep.mubr.bf16.mxu0 %v2655_v7  ;;  %1266 = vmatprep.mubr.bf16.mxu1 %v2655_v7 }
 0x516   :  { %1196 = vmatpush1.bf16.msra.mxu0 %v2429_v40  ;;  %1237 = vmatpush1.bf16.msra.mxu1 %v2435_v48 }
 0x517   :  { %1197 = vmatprep.subr.bf16.mxu0 %v2441_v52  ;;  %1238 = vmatprep.subr.bf16.mxu1 %v2447_v22 }
 0x51a   :  { %1198 = vmatpush1.bf16.msra.mxu0 %v2453_v63  ;;  %1239 = vmatpush1.bf16.msra.mxu1 %v2459_v10 }
 0x51b   :  { %1199 = vmatprep.subr.bf16.mxu0 %v2465_v8  ;;  %1240 = vmatprep.subr.bf16.mxu1 %v2471_v55 }
 0x51e   :  { %1200 = vmatpush1.bf16.msra.mxu0 %v2477_v16  ;;  %1241 = vmatpush1.bf16.msra.mxu1 %v2483_v17 }
 0x51f   :  { %1201 = vmatprep.subr.bf16.mxu0 %v2489_v18  ;;  %1242 = vmatprep.subr.bf16.mxu1 %v2495_v19 }
 0x522   :  { %1202 = vmatpush1.bf16.msra.mxu0 %v2000_v32  ;;  %1243 = vmatpush1.bf16.msra.mxu1 %v2007_v33 }
 0x523   :  { %1203 = vmatprep.subr.bf16.mxu0 %v2012_v34  ;;  %1244 = vmatprep.subr.bf16.mxu1 %v2019_v35  ;;  %v2665_v34 = vld [vmem:[#allocation12_spill] sm:$0xff] }
 0x526   :  { %1204 = vmatpush1.bf16.msra.mxu0 %v2026_v36  ;;  %1245 = vmatpush1.bf16.msra.mxu1 %v2031_v37  ;;  %v2666_v36 = vld [vmem:[#allocation13_spill] sm:$0xff] }
 0x527   :  { %1205 = vmatprep.subr.bf16.mxu0 %v2038_v38  ;;  %1246 = vmatprep.subr.bf16.mxu1 %v2045_v39 }
 0x52a   :  { %1206 = vmatpush1.bf16.msra.mxu0 %v2057_v41  ;;  %1247 = vmatpush1.bf16.msra.mxu1 %v2062_v42  ;;  %v2667_v41 = vld [vmem:[#allocation14_spill] sm:$0xff] }
 0x52b   :  { %1207 = vmatprep.subr.bf16.mxu0 %v2069_v43  ;;  %1248 = vmatprep.subr.bf16.mxu1 %v2074_v44  ;;  %v2668_v43 = vld [vmem:[#allocation15_spill] sm:$0xff] }
 0x52e   :  { %1208 = vmatpush1.bf16.msra.mxu0 %v2083_v45  ;;  %1249 = vmatpush1.bf16.msra.mxu1 %v2088_v46 }
 0x52f   :  { %1305 = vmatprep.subr.bf16.mxu0 %v2383_v14  ;;  %1346 = vmatprep.subr.bf16.mxu1 %v2389_v15 }
 0x5e4   :  { %v1115_v32 = vpop.f32.mrb[36].mxu0  ;;  %v1156_v33 = vpop.f32.mrb[36].mxu1 }
 0x5e5   :  { %v1163_v35 = vadd.f32 %v1115_v32, %v2665_v34  ;;  %v1165_v37 = vadd.f32 %v1156_v33, %v2666_v36  ;;  %v1117_v38 = vpop.f32.mrb[37].mxu0  ;;  %v1158_v39 = vpop.f32.mrb[37].mxu1 }
 0x5e6   :  { %v1164_v42 = vadd.f32 %v1117_v38, %v2667_v41  ;;  %v1166_v44 = vadd.f32 %v1158_v39, %v2668_v43  ;;  %v1119_v20 = vpop.f32.mrb[38].mxu0  ;;  %v1160_v45 = vpop.f32.mrb[38].mxu1 }
 0x5e7   :  { %v1167_v21 = vmul.f32 0.5, %v1163_v35  ;;  %v1120_v46 = vpop.f32.mrb[39].mxu0  ;;  %v1161_v23 = vpop.f32.mrb[39].mxu1  ;;  %v1169_v15 = vmul.f32 0.5, %v1165_v37 }
 0x5e8   :  { %v1168_v14 = vmul.f32 0.5, %v1164_v42 }
 0x5e9   :  { %1750 = vtanh.f32 %v1167_v21 }
 0x5ea   :  { %1752 = vtanh.f32 %v1168_v14 }
 0x5eb   :  { %1754 = vtanh.f32 %v1166_v44 }
 0x5ec   :  { %1756 = vtanh.f32 %v1169_v15 }
 0x5f3   :  { %v1751_v24 = vpop.eup %1750 }
 0x5f4   :  { %v1173_v25 = vmul.f32 0.5, %v1751_v24  ;;  %v1753_v26 = vpop.eup %1752 }
 0x5f5   :  { %v1174_v28 = vmul.f32 0.5, %v1753_v26  ;;  %v1755_v29 = vpop.eup %1754  ;;  %v1813_v26 = vmov 0.0  }
 0x5f6   :  { %v1176_v27 = vadd.f32 0.5, %v1173_v25  ;;  %v1757_v57 = vpop.eup %1756  ;;  %v1692_v25 = vld [vmem:[%s2629_s4] sm:$0xff]  }
 0x5f7   :  { %v1177_v30 = vadd.f32 0.5, %v1174_v28  ;;  %v1175_v58 = vmul.f32 0.5, %v1757_v57  ;;  %v1694_v28 = vld [vmem:[%s2629_s4 + $0x10] sm:$0xff]  }
 0x5f8   :  { %v1181_v62 = vmul.f32 %v1755_v29, %v1176_v27  ;;  %v1693_v27 = vld [vmem:[%s2629_s4 + $0x8] sm:$0xff]   ;;  %v1695_v29 = vld [vmem:[%s2629_s4 + $0x18] sm:$0xff]  }
 0x5f9   :  { %v1180_v54 = vmul.f32 %v1177_v30, %v2397_v9  ;;  %v1178_v59 = vadd.f32 0.5, %v1175_v58  ;;  %v1804_v9 = vld [vmem:[%s2627_s2 + $0xc4] ss:$16 sps:$4 sm:$0xff]  }
 0x5fa   :  { %v1696_v30 = vld [vmem:[%s2629_s4 + $0x20] sm:$0xff]  }
 0x5fb   :  { %v2519_v56 = vadd.f32 %v1181_v62, %v1180_v54  ;;  %v1697_v62 = vld [vmem:[%s2629_s4 + $0x28] sm:$0xff]   ;;  %v1698_v54 = vld [vmem:[%s2629_s4 + $0x30] sm:$0xff]  }
 0x5fd   :  { %1758 = vtanh.f32 %v2519_v56 }
 0x607   :  { %v1759_v1 = vpop.eup %1758 }
 0x608   :  { %v1184_v60 = vmul.f32 %v1759_v1, %v1178_v59  ;;  %v2673_v59 = vld [vmem:[#allocation20_spill] sm:$0xff] }
 0x60a   :  { %v1192_v61 = vpack.c.bf16 %v1184_v60, %v1184_v60  ;;  %v2674_v60 = vld [vmem:[#allocation21_spill] sm:$0xff] }
 0x60c   :  { %1226 = vmatmul.mubr.bf16.vlgmr.msra.gmra.mrb[40].mxu0 %v1192_v61  ;;  %1267 = vmatmul.mubr.bf16.vlgmr.msra.gmra.mrb[40].mxu1 %v1192_v61 }
 0x60d   :  { %1306 = vmatpush1.bf16.msra.mxu0 %v2403_v31  ;;  %1347 = vmatpush1.bf16.msra.mxu1 %v2409_v6  ;;  %v1811_v31 = vld [vmem:[%s2627_s2 + $0xe8] ss:$16 sps:$4 sm:$0xff]  }
 0x60e   :  { %1307 = vmatprep.subr.bf16.mxu0 %v2415_v50  ;;  %1348 = vmatprep.subr.bf16.mxu1 %v2421_v53  ;;  %v2669_v53 = vld [vmem:[#allocation16_spill] sm:$0xff] }
 0x60f   :  { %1337 = vmatprep.mubr.bf16.mxu0 %v2655_v7  ;;  %1378 = vmatprep.mubr.bf16.mxu1 %v2655_v7  ;;  %v1798_v7 = vld [vmem:[%s2627_s2 + $0x80] ss:$16 sps:$4 sm:$0xff]  }
 0x611   :  { %1308 = vmatpush1.bf16.msra.mxu0 %v2429_v40  ;;  %1349 = vmatpush1.bf16.msra.mxu1 %v2435_v48  ;;  %v2670_v48 = vld [vmem:[#allocation17_spill] sm:$0xff] }
 0x612   :  { %1309 = vmatprep.subr.bf16.mxu0 %v2441_v52  ;;  %1350 = vmatprep.subr.bf16.mxu1 %v2447_v22 }
 0x615   :  { %1310 = vmatpush1.bf16.msra.mxu0 %v2453_v63  ;;  %1351 = vmatpush1.bf16.msra.mxu1 %v2459_v10  ;;  %v2671_v10 = vld [vmem:[#allocation18_spill] sm:$0xff] }
 0x616   :  { %1311 = vmatprep.subr.bf16.mxu0 %v2465_v8  ;;  %1352 = vmatprep.subr.bf16.mxu1 %v2471_v55  ;;  %v2672_v55 = vld [vmem:[#allocation19_spill] sm:$0xff] }
 0x619   :  { %1312 = vmatpush1.bf16.msra.mxu0 %v2477_v16  ;;  %1353 = vmatpush1.bf16.msra.mxu1 %v2483_v17 }
 0x61a   :  { %1313 = vmatprep.subr.bf16.mxu0 %v2489_v18  ;;  %1354 = vmatprep.subr.bf16.mxu1 %v2495_v19 }
 0x61d   :  { %1314 = vmatpush1.bf16.msra.mxu0 %v1798_v7  ;;  %1355 = vmatpush1.bf16.msra.mxu1 %v1799_v4 }
 0x61e   :  { %1315 = vmatprep.subr.bf16.mxu0 %v1800_v0  ;;  %1356 = vmatprep.subr.bf16.mxu1 %v1801_v2  ;;  %v2675_v0 = vld [vmem:[#allocation22_spill] sm:$0xff] }
 0x621   :  { %1316 = vmatpush1.bf16.msra.mxu0 %v1802_v3  ;;  %1357 = vmatpush1.bf16.msra.mxu1 %v1803_v47  ;;  %v2676_v3 = vld [vmem:[#allocation23_spill] sm:$0xff] }
 0x622   :  { %1317 = vmatprep.subr.bf16.mxu0 %v1804_v9  ;;  %1358 = vmatprep.subr.bf16.mxu1 %v1805_v12 }
 0x625   :  { %1318 = vmatpush1.bf16.msra.mxu0 %v1806_v13  ;;  %1359 = vmatpush1.bf16.msra.mxu1 %v1807_v49 }
 0x626   :  { %1319 = vmatprep.subr.bf16.mxu0 %v1808_v11  ;;  %1360 = vmatprep.subr.bf16.mxu1 %v1809_v5 }
 0x629   :  { %1320 = vmatpush1.bf16.msra.mxu0 %v1810_v51  ;;  %1361 = vmatpush1.bf16.msra.mxu1 %v1811_v31 }
 0x62a   :  { %1605 = vmatprep.subr.bf16.mxu0 %v1813_v26 }
 0x6df   :  { %v1227_v6 = vpop.f32.mrb[40].mxu0  ;;  %v1268_v50 = vpop.f32.mrb[40].mxu1 }
 0x6e0   :  { %v1275_v40 = vadd.f32 %v1227_v6, %v2669_v53  ;;  %v1277_v52 = vadd.f32 %v1268_v50, %v2670_v48  ;;  %v1229_v22 = vpop.f32.mrb[41].mxu0  ;;  %v1270_v63 = vpop.f32.mrb[41].mxu1 }
 0x6e1   :  { %v1276_v8 = vadd.f32 %v1229_v22, %v2671_v10  ;;  %v1278_v16 = vadd.f32 %v1270_v63, %v2672_v55  ;;  %v1231_v17 = vpop.f32.mrb[42].mxu0  ;;  %v1272_v18 = vpop.f32.mrb[42].mxu1 }
 0x6e2   :  { %v1279_v19 = vmul.f32 0.5, %v1275_v40  ;;  %v1232_v32 = vpop.f32.mrb[43].mxu0  ;;  %v1273_v33 = vpop.f32.mrb[43].mxu1  ;;  %v1281_v35 = vmul.f32 0.5, %v1277_v52 }
 0x6e3   :  { %v1280_v34 = vmul.f32 0.5, %v1276_v8  ;;  %v1587_v32 = vld [vmem:[%s2630_s5] ss:$0 sm:$0xff] }
 0x6e4   :  { %1760 = vtanh.f32 %v1279_v19 }
 0x6e5   :  { %1762 = vtanh.f32 %v1280_v34 }
 0x6e6   :  { %1764 = vtanh.f32 %v1278_v16 }
 0x6e7   :  { %1766 = vtanh.f32 %v1281_v35 }
 0x6ee   :  { %v1761_v36 = vpop.eup %1760 }
 0x6ef   :  { %v1285_v37 = vmul.f32 0.5, %v1761_v36  ;;  %v1763_v38 = vpop.eup %1762 }
 0x6f0   :  { %v1286_v41 = vmul.f32 0.5, %v1763_v38  ;;  %v1765_v42 = vpop.eup %1764 }
 0x6f1   :  { %v1288_v39 = vadd.f32 0.5, %v1285_v37  ;;  %v1767_v21 = vpop.eup %1766 }
 0x6f2   :  { %v1289_v43 = vadd.f32 0.5, %v1286_v41  ;;  %v1287_v46 = vmul.f32 0.5, %v1767_v21 }
 0x6f3   :  { %v1293_v44 = vmul.f32 %v1765_v42, %v1288_v39 }
 0x6f4   :  { %v1292_v20 = vmul.f32 %v1289_v43, %v2519_v56  ;;  %v1290_v23 = vadd.f32 0.5, %v1287_v46  ;;  %v1699_v56 = vld [vmem:[%s2629_s4 + $0x38] sm:$0xff]  }
 0x6f6   :  { %v2587_v45 = vadd.f32 %v1293_v44, %v1292_v20 }
 0x6f8   :  { %1768 = vtanh.f32 %v2587_v45 }
 0x702   :  { %v1769_v14 = vpop.eup %1768 }
 0x703   :  { %v1296_v15 = vmul.f32 %v1769_v14, %v1290_v23 }
 0x705   :  { %v1304_v24 = vpack.c.bf16 %v1296_v15, %v1296_v15 }
 0x707   :  { %1338 = vmatmul.mubr.bf16.vlgmr.msra.gmra.mrb[44].mxu0 %v1304_v24  ;;  %1379 = vmatmul.mubr.bf16.vlgmr.msra.gmra.mrb[44].mxu1 %v1304_v24 }
 0x708   :  { %1606 = vmatpush3.bf16.msra.mxu0 %v1692_v25  ;;  %1621 = vmatprep.mubr.msk.bf16.mxu0 %vm1814_vm2, %v1813_v26 }
 0x709   :  { %1607 = vmatprep.subr.bf16.mxu0 %v1813_v26 }
 0x70c   :  { %1608 = vmatpush3.bf16.msra.mxu0 %v1693_v27 }
 0x70d   :  { %1609 = vmatprep.subr.bf16.mxu0 %v1813_v26 }
 0x710   :  { %1610 = vmatpush3.bf16.msra.mxu0 %v1694_v28 }
 0x711   :  { %1611 = vmatprep.subr.bf16.mxu0 %v1813_v26 }
 0x714   :  { %1612 = vmatpush3.bf16.msra.mxu0 %v1695_v29 }
 0x715   :  { %1613 = vmatprep.subr.bf16.mxu0 %v1813_v26 }
 0x718   :  { %1614 = vmatpush3.bf16.msra.mxu0 %v1696_v30 }
 0x719   :  { %1615 = vmatprep.subr.bf16.mxu0 %v1813_v26 }
 0x71c   :  { %1616 = vmatpush3.bf16.msra.mxu0 %v1697_v62 }
 0x71d   :  { %1617 = vmatprep.subr.bf16.mxu0 %v1813_v26 }
 0x720   :  { %1618 = vmatpush3.bf16.msra.mxu0 %v1698_v54 }
 0x721   :  { %1619 = vmatprep.subr.bf16.mxu0 %v1813_v26 }
 0x724   :  { %1620 = vmatpush3.bf16.msra.mxu0 %v1699_v56 }
 0x7da   :  { %v1339_v57 = vpop.f32.mrb[44].mxu0  ;;  %v1380_v58 = vpop.f32.mrb[44].mxu1 }
 0x7db   :  { %v1387_v1 = vadd.f32 %v1339_v57, %v2673_v59  ;;  %v1389_v61 = vadd.f32 %v1380_v58, %v2674_v60  ;;  %v1341_v7 = vpop.f32.mrb[45].mxu0  ;;  %v1382_v4 = vpop.f32.mrb[45].mxu1 }
 0x7dc   :  { %v1388_v2 = vadd.f32 %v1341_v7, %v2675_v0  ;;  %v1390_v47 = vadd.f32 %v1382_v4, %v2676_v3  ;;  %v1343_v9 = vpop.f32.mrb[46].mxu0  ;;  %v1384_v12 = vpop.f32.mrb[46].mxu1 }
 0x7dd   :  { %v1391_v13 = vmul.f32 0.5, %v1387_v1  ;;  %v1344_v49 = vpop.f32.mrb[47].mxu0  ;;  %v1385_v11 = vpop.f32.mrb[47].mxu1  ;;  %v1393_v51 = vmul.f32 0.5, %v1389_v61 }
 0x7de   :  { %v1392_v5 = vmul.f32 0.5, %v1388_v2 }
 0x7df   :  { %1770 = vtanh.f32 %v1391_v13 }
 0x7e0   :  { %1772 = vtanh.f32 %v1392_v5 }
 0x7e1   :  { %1774 = vtanh.f32 %v1390_v47 }
 0x7e2   :  { %1776 = vtanh.f32 %v1393_v51 }
 0x7e9   :  { %v1771_v31 = vpop.eup %1770 }
 0x7ea   :  { %v1397_v6 = vmul.f32 0.5, %v1771_v31  ;;  %v1773_v50 = vpop.eup %1772 }
 0x7eb   :  { %v1398_v40 = vmul.f32 0.5, %v1773_v50  ;;  %v1775_v48 = vpop.eup %1774 }
 0x7ec   :  { %v1400_v53 = vadd.f32 0.5, %v1397_v6  ;;  %v1777_v8 = vpop.eup %1776 }
 0x7ed   :  { %v1401_v52 = vadd.f32 0.5, %v1398_v40  ;;  %v1399_v55 = vmul.f32 0.5, %v1777_v8 }
 0x7ee   :  { %v1405_v22 = vmul.f32 %v1775_v48, %v1400_v53 }
 0x7ef   :  { %v1404_v63 = vmul.f32 %v1401_v52, %v2587_v45  ;;  %v1402_v16 = vadd.f32 0.5, %v1399_v55 }
 0x7f1   :  { %v1406_v10 = vadd.f32 %v1405_v22, %v1404_v63 }
 0x7f3   :  { %1778 = vtanh.f32 %v1406_v10 }
 0x7fd   :  { %v1779_v17 = vpop.eup %1778 }
 0x7fe   :  { %v1408_v18 = vmul.f32 %v1779_v17, %v1402_v16 }
 0x800   :  { %v1409_v19 = vpack.c.bf16 %v1408_v18, %v1408_v18 }
 0x802   :  { %1622 = vmatmul.mubr.bf16.vlgmr.msra.gmra.mrb[48].mxu0 %v1409_v19 }
 0x8d5   :  { %v1515_v33 = vpop.f32.mrb[48].mxu0 }
 0x8d6   :  { %v1516_v34 = vadd.f32 %v1587_v32, %v1515_v33  ;;  %v1623_v35 = vpop.f32.mrb[49].mxu0 }
 0x8d7   :  { %v1518_v36 = vpop.f32.mrb[50].mxu0 }
 0x8d8   :  { %1521 = vst [vmem:[%s2631_s6] sm:$0xff] %v1516_v34  ;;  %v1624_v37 = vpop.f32.mrb[51].mxu0 }

</bundles_post_ra>
